<compile_context>
chip_gen: v7x
topology: tpu7x:2x2x1
jax: 0.10.0
libtpu: 0.0.40
codegen_flags: <defaults>
</compile_context>

<pallas_src>
import functools

import jax
import jax.numpy as jnp
from jax.experimental import pallas as pl
from jax.experimental.pallas import tpu as pltpu

MX = 4        # bottleneck factor (`mx` undefined in snippet; PAWS default = 4)
EPS = 1e-5    # BatchNorm1d default eps
LANE = 128
SUBLANE = 8


# ---------------------------------------------------------------------------
# Small helpers
# ---------------------------------------------------------------------------
def _round_up(a, b):
    return ((a + b - 1) // b) * b


def _vmem_cap_bytes():
    try:
        return int(pltpu.get_tpu_info().vmem_capacity_bytes)
    except Exception:                      # pragma: no cover
        return 64 << 20                    # conservative (v7x per-TC VMEM)


def _const_spec(shape):
    """BlockSpec for a grid-invariant operand: constant index, single buffer."""
    index_map = lambda *_: (0,) * len(shape)
    try:
        return pl.BlockSpec(shape, index_map, pipeline_mode=pl.Buffered(1))
    except Exception:                      # pragma: no cover (older jax)
        return pl.BlockSpec(shape, index_map)


def _mosaic_params(dims, est_bytes, cap):
    kwargs = dict(dimension_semantics=dims)
    # Only raise the scoped-VMEM limit when the footprint would overflow the
    # smallest default (v5e 16 MiB); keep well under physical capacity.
    if est_bytes > (12 << 20):
        kwargs["vmem_limit_bytes"] = int(
            min(cap * 0.85, est_bytes * 1.5 + (4 << 20)))
    return pltpu.CompilerParams(**kwargs)


def _choose_tile_n(n, target, gran, fits):
    """Largest tile (multiple of `gran`) <= target that fits the VMEM budget,
    preferring an exact divisor of n so no batch padding is needed."""
    cand = min(max((target // gran) * gran, gran), _round_up(n, gran))
    while cand > gran and not fits(cand):
        cand -= gran
    for t in range(cand, gran - 1, -gran):
        if n % t == 0:
            return t
    return cand


# ---------------------------------------------------------------------------
# Pass A: per-feature sum / sum-of-squares of x  (BN1 batch statistics).
# Grid = (ncore, tiles-per-core); each core accumulates into its own (8, D)
# slab (sublane-deferred reduce); slabs are reduced in XLA afterwards.
# ---------------------------------------------------------------------------
def _x_stats_kernel(x_ref, sum_ref, sq_ref):
    @pl.when(pl.program_id(1) == 0)
    def _():
        sum_ref[...] = jnp.zeros_like(sum_ref)
        sq_ref[...] = jnp.zeros_like(sq_ref)

    x = x_ref[...].astype(jnp.float32)
    xg = x.reshape(-1, SUBLANE, x.shape[-1])     # (tn//8, 8, D): vreg-wise adds
    sum_ref[...] += jnp.sum(xg, axis=0)
    sq_ref[...] += jnp.sum(xg * xg, axis=0)


# ---------------------------------------------------------------------------
# Pass B (fused): two-phase grid (phase, batch-tile).
#   phase 0: h = (x*a1 + c1) @ W1 + b1  -> VMEM scratch, accumulate BN2 stats
#   boundary: a2/c2 = BN2 affine from the accumulated statistics
#   phase 1: out = relu(h*a2 + c2) @ W2 + b2
# ---------------------------------------------------------------------------
def _fused_fc_kernel(x_ref, a1_ref, c1_ref, w1_ref, b1_ref,
                     g2_ref, be2_ref, w2_ref, b2_ref,
                     o_ref,
                     h_ref, s_ref, q_ref, a2_ref, c2_ref,
                     *, tn, n_valid, inv_n, mask_pad):
    p = pl.program_id(0)
    i = pl.program_id(1)
    off = pl.multiple_of(i * tn, tn)

    @pl.when(jnp.logical_and(p == 0, i == 0))
    def _init():
        s_ref[...] = jnp.zeros_like(s_ref)
        q_ref[...] = jnp.zeros_like(q_ref)

    @pl.when(p == 0)
    def _phase_fc1():
        xn = x_ref[...].astype(jnp.float32) * a1_ref[...] + c1_ref[...]
        h = jnp.dot(xn.astype(w1_ref.dtype), w1_ref[...],
                    preferred_element_type=jnp.float32) + b1_ref[...]
        hs = h
        if mask_pad:   # zero out padded batch rows so they don't skew BN2 stats
            row = i * tn + jax.lax.broadcasted_iota(jnp.int32, h.shape, 0)
            hs = jnp.where(row < n_valid, h, 0.0)
        hg = hs.reshape(-1, SUBLANE, hs.shape[-1])
        s_ref[...] += jnp.sum(hg, axis=0)
        q_ref[...] += jnp.sum(hg * hg, axis=0)
        h_ref[pl.ds(off, tn), :] = h.astype(h_ref.dtype)

    @pl.when(jnp.logical_and(p == 1, i == 0))
    def _bn2_affine():
        m2 = jnp.sum(s_ref[...], axis=0, keepdims=True) * inv_n
        ex2 = jnp.sum(q_ref[...], axis=0, keepdims=True) * inv_n
        v2 = jnp.maximum(ex2 - m2 * m2, 0.0)
        a2 = g2_ref[...] * jax.lax.rsqrt(v2 + EPS)
        a2_ref[...] = a2
        c2_ref[...] = be2_ref[...] - m2 * a2

    @pl.when(p == 1)
    def _phase_fc2():
        h = h_ref[pl.ds(off, tn), :].astype(jnp.float32)
        t = jnp.maximum(h * a2_ref[...] + c2_ref[...], 0.0)
        out = jnp.dot(t.astype(w2_ref.dtype), w2_ref[...],
                      preferred_element_type=jnp.float32) + b2_ref[...]
        o_ref[...] = out.astype(o_ref.dtype)


# ---------------------------------------------------------------------------
# Pass B fallback (unfused): h goes through HBM when N*HP exceeds VMEM budget.
# ---------------------------------------------------------------------------
def _fc1_kernel(x_ref, a1_ref, c1_ref, w1_ref, b1_ref,
                h_ref, s_ref, q_ref, *, tn, n_valid, mask_pad):
    i = pl.program_id(0)

    @pl.when(i == 0)
    def _():
        s_ref[...] = jnp.zeros_like(s_ref)
        q_ref[...] = jnp.zeros_like(q_ref)

    xn = x_ref[...].astype(jnp.float32) * a1_ref[...] + c1_ref[...]
    h = jnp.dot(xn.astype(w1_ref.dtype), w1_ref[...],
                preferred_element_type=jnp.float32) + b1_ref[...]
    hs = h
    if mask_pad:
        row = i * tn + jax.lax.broadcasted_iota(jnp.int32, h.shape, 0)
        hs = jnp.where(row < n_valid, h, 0.0)
    s_ref[...] += jnp.sum(hs, axis=0, keepdims=True)
    q_ref[...] += jnp.sum(hs * hs, axis=0, keepdims=True)
    h_ref[...] = h.astype(h_ref.dtype)


def _fc2_kernel(h_ref, a2_ref, c2_ref, w2_ref, b2_ref, o_ref):
    h = h_ref[...].astype(jnp.float32)
    t = jnp.maximum(h * a2_ref[...] + c2_ref[...], 0.0)
    out = jnp.dot(t.astype(w2_ref.dtype), w2_ref[...],
                  preferred_element_type=jnp.float32) + b2_ref[...]
    o_ref[...] = out.astype(o_ref.dtype)


# ---------------------------------------------------------------------------
# Wrapper
# ---------------------------------------------------------------------------
@functools.partial(jax.jit,
                   static_argnames=("tile_n", "out_dtype", "force_unfused"))
def prediction_head(x, p, *, tile_n=256, out_dtype=None, force_unfused=False):
    """Forward pass of PredictionHead (training-mode BN) via Pallas TPU kernels.

    x: (N, D).  p: output of prepare_params() (padded / pre-cast weights).
    """
    N, D = x.shape
    HP = p["w1"].shape[1]
    cdt = p["w1"].dtype
    odt = jnp.dtype(out_dtype) if out_dtype is not None else x.dtype
    cdt_b = jnp.dtype(cdt).itemsize
    odt_b = jnp.dtype(odt).itemsize
    inv_n = 1.0 / float(N)

    cap = _vmem_cap_bytes()
    budget = int(cap * 0.70)
    gran = 16 if cdt_b < 4 else 8                  # bf16 sublane packing
    small_b = (3 * D + 3 * HP) * 4                 # (1,D)/(1,HP) f32 vectors
    w_b = 2 * D * HP * cdt_b                       # w1 + w2, single-buffered
    const_b = w_b + small_b

    def fused_fits(tn):
        npad = _round_up(N, tn)
        return (const_b + npad * HP * cdt_b + 2 * tn * D * 4
                + 2 * tn * D * odt_b + 24 * HP * 4) <= budget

    def unfused_fits(tn):
        return (const_b + 2 * tn * D * 4 + 2 * tn * HP * cdt_b
                + 2 * tn * D * odt_b + 4 * HP * 4) <= budget

    use_fused = (not force_unfused) and fused_fits(gran)
    fits = fused_fits if use_fused else unfused_fits
    tn = _choose_tile_n(N, tile_n, gran, fits)
    n_pad = _round_up(N, tn)
    nt = n_pad // tn
    mask_pad = n_pad != N

    xp = x if not mask_pad else jnp.pad(x, ((0, n_pad - N), (0, 0)))

    # ---- pass A: BN1 batch statistics (core-parallel on v7x) ---------------
    ncore = 2 if nt % 2 == 0 else 1
    nt_a = nt // ncore
    est_a = 2 * tn * D * 4 + 4 * ncore * SUBLANE * D * 4
    sum_x, sq_x = pl.pallas_call(
        _x_stats_kernel,
        grid=(ncore, nt_a),
        in_specs=[pl.BlockSpec((tn, D), lambda c, i: (c * nt_a + i, 0))],
        out_specs=(pl.BlockSpec((SUBLANE, D), lambda c, i: (c, 0)),
                   pl.BlockSpec((SUBLANE, D), lambda c, i: (c, 0))),
        out_shape=(jax.ShapeDtypeStruct((ncore * SUBLANE, D), jnp.float32),
                   jax.ShapeDtypeStruct((ncore * SUBLANE, D), jnp.float32)),
        compiler_params=_mosaic_params(("parallel", "arbitrary"), est_a, cap),
    )(xp)

    m1 = jnp.sum(sum_x, axis=0, keepdims=True) * inv_n
    ex1 = jnp.sum(sq_x, axis=0, keepdims=True) * inv_n
    v1 = jnp.maximum(ex1 - m1 * m1, 0.0)
    a1 = p["bn1_gamma"] * jax.lax.rsqrt(v1 + EPS)          # (1, D) BN1 scale
    c1 = p["bn1_beta"] - m1 * a1                            # (1, D) BN1 shift

    if use_fused:
        # ---- pass B (fused): fc1 + BN2 stats -> BN2 affine + ReLU + fc2 ----
        est_f = (const_b + n_pad * HP * cdt_b + 2 * tn * D * 4
                 + 2 * tn * D * odt_b + 24 * HP * 4)
        kern = functools.partial(_fused_fc_kernel, tn=tn, n_valid=N,
                                 inv_n=inv_n, mask_pad=mask_pad)
        out = pl.pallas_call(
            kern,
            grid=(2, nt),
            in_specs=[
                # phase 0: stream x tiles; phase 1: hold last block (no DMA).
                pl.BlockSpec((tn, D),
                             lambda ph, i: (i * (1 - ph) + (nt - 1) * ph, 0)),
                _const_spec((1, D)),     # a1
                _const_spec((1, D)),     # c1
                _const_spec((D, HP)),    # w1 (resident, single-buffered)
                _const_spec((1, HP)),    # b1
                _const_spec((1, HP)),    # bn2 gamma
                _const_spec((1, HP)),    # bn2 beta
                _const_spec((HP, D)),    # w2 (resident, single-buffered)
                _const_spec((1, D)),     # b2
            ],
            # phase 0 parks on block 0 (never written); phase 1 writes tile i.
            out_specs=pl.BlockSpec((tn, D), lambda ph, i: (i * ph, 0)),
            out_shape=jax.ShapeDtypeStruct((n_pad, D), odt),
            scratch_shapes=[
                pltpu.VMEM((n_pad, HP), cdt),        # h stays in VMEM
                pltpu.VMEM((SUBLANE, HP), jnp.float32),   # BN2 sum slab
                pltpu.VMEM((SUBLANE, HP), jnp.float32),   # BN2 sum-of-squares
                pltpu.VMEM((1, HP), jnp.float32),         # a2
                pltpu.VMEM((1, HP), jnp.float32),         # c2
            ],
            compiler_params=_mosaic_params(("arbitrary", "arbitrary"), est_f, cap),
        )(xp, a1, c1, p["w1"], p["b1"], p["g2"], p["be2"], p["w2"], p["b2"])
        return out[:N] if mask_pad else out

    # ---- pass B fallback (unfused): h round-trips through HBM --------------
    est1 = (D * HP * cdt_b + (2 * D + 3 * HP) * 4
            + 2 * tn * D * 4 + 2 * tn * HP * cdt_b)
    kern1 = functools.partial(_fc1_kernel, tn=tn, n_valid=N, mask_pad=mask_pad)
    h, sum_h, sq_h = pl.pallas_call(
        kern1,
        grid=(nt,),
        in_specs=[pl.BlockSpec((tn, D), lambda i: (i, 0)),
                  _const_spec((1, D)), _const_spec((1, D)),
                  _const_spec((D, HP)), _const_spec((1, HP))],
        out_specs=(pl.BlockSpec((tn, HP), lambda i: (i, 0)),
                   pl.BlockSpec((1, HP), lambda i: (0, 0)),
                   pl.BlockSpec((1, HP), lambda i: (0, 0))),
        out_shape=(jax.ShapeDtypeStruct((n_pad, HP), cdt),
                   jax.ShapeDtypeStruct((1, HP), jnp.float32),
                   jax.ShapeDtypeStruct((1, HP), jnp.float32)),
        compiler_params=_mosaic_params(("arbitrary",), est1, cap),
    )(xp, a1, c1, p["w1"], p["b1"])

    m2 = sum_h * inv_n
    v2 = jnp.maximum(sq_h * inv_n - m2 * m2, 0.0)
    a2 = p["g2"] * jax.lax.rsqrt(v2 + EPS)
    c2 = p["be2"] - m2 * a2

    est2 = (HP * D * cdt_b + (2 * HP + 2 * D) * 4
            + 2 * tn * HP * cdt_b + 2 * tn * D * odt_b)
    out = pl.pallas_call(
        _fc2_kernel,
        grid=(nt,),
        in_specs=[pl.BlockSpec((tn, HP), lambda i: (i, 0)),
                  _const_spec((1, HP)), _const_spec((1, HP)),
                  _const_spec((HP, D)), _const_spec((1, D))],
        out_specs=pl.BlockSpec((tn, D), lambda i: (i, 0)),
        out_shape=jax.ShapeDtypeStruct((n_pad, D), odt),
        compiler_params=_mosaic_params(("parallel",), est2, cap),
    )(h, a2, c2, p["w2"], p["b2"])
    return out[:N] if mask_pad else out


# ---------------------------------------------------------------------------
# Parameter handling
# ---------------------------------------------------------------------------
def prepare_params(params, compute_dtype=jnp.bfloat16):
    """One-time, batch-independent prep: pad hidden width to a lane-dense
    multiple of 128 and cast matmul weights to the compute dtype."""
    D, H = params["fc1_w"].shape
    HP = _round_up(H, LANE)
    padH = HP - H
    return dict(
        bn1_gamma=params["bn1_gamma"].astype(jnp.float32),
        bn1_beta=params["bn1_beta"].astype(jnp.float32),
        w1=jnp.pad(params["fc1_w"], ((0, 0), (0, padH))).astype(compute_dtype),
        b1=jnp.pad(params["fc1_b"], ((0, 0), (0, padH))).astype(jnp.float32),
        g2=jnp.pad(params["bn2_gamma"], ((0, 0), (0, padH))).astype(jnp.float32),
        be2=jnp.pad(params["bn2_beta"], ((0, 0), (0, padH))).astype(jnp.float32),
        w2=jnp.pad(params["fc2_w"], ((0, padH), (0, 0))).astype(compute_dtype),
        b2=params["fc2_b"].astype(jnp.float32),
    )


def init_params(key, output_dim):
    """Deterministic synthetic parameters matching the PyTorch module shapes."""
    D = output_dim
    H = D // MX
    k1, k2, k3, k4, k5, k6 = jax.random.split(key, 6)
    bn1_gamma = 1.0 + 0.1 * jax.random.normal(k1, (1, D), jnp.float32)
    bn1_beta = 0.1 * jax.random.normal(k2, (1, D), jnp.float32)
    bn2_gamma = 1.0 + 0.1 * jax.random.normal(k3, (1, H), jnp.float32)
    bn2_beta = 0.1 * jax.random.normal(k4, (1, H), jnp.float32)
    # PyTorch Linear stores (out, in); kernels take pre-transposed (in, out).
    lim1 = 1.0 / (D ** 0.5)
    fc1_w = jax.random.uniform(k5, (D, H), jnp.float32, -lim1, lim1)
    fc1_b = jnp.zeros((1, H), jnp.float32)
    lim2 = 1.0 / (H ** 0.5)
    fc2_w = jax.random.uniform(k6, (H, D), jnp.float32, -lim2, lim2)
    fc2_b = jnp.zeros((1, D), jnp.float32)
    return dict(bn1_gamma=bn1_gamma, bn1_beta=bn1_beta,
                fc1_w=fc1_w, fc1_b=fc1_b,
                bn2_gamma=bn2_gamma, bn2_beta=bn2_beta,
                fc2_w=fc2_w, fc2_b=fc2_b)


def _reference(x, p):
    """Pure-JAX f32 reference of the PyTorch forward (training-mode BN)."""
    m1 = x.mean(0, keepdims=True)
    v1 = ((x - m1) ** 2).mean(0, keepdims=True)
    xh = (x - m1) / jnp.sqrt(v1 + EPS) * p["bn1_gamma"] + p["bn1_beta"]
    h = xh @ p["fc1_w"] + p["fc1_b"]
    m2 = h.mean(0, keepdims=True)
    v2 = ((h - m2) ** 2).mean(0, keepdims=True)
    hh = (h - m2) / jnp.sqrt(v2 + EPS) * p["bn2_gamma"] + p["bn2_beta"]
    hh = jnp.maximum(hh, 0.0)
    return hh @ p["fc2_w"] + p["fc2_b"]


# TODO(synk): training-mode BN running_mean/running_var buffer updates are a
# module side effect not materialized here (forward output is unaffected).

if __name__ == "__main__":
    key = jax.random.PRNGKey(0)
    kx, kp = jax.random.split(key)

    N, D = 256, 128              # module defaults: output_dim=128, hidden=D//4=32
    x = jax.random.normal(kx, (N, D), jnp.float32)
    raw = init_params(kp, D)
    ref = _reference(x, raw)

    # 1) f32 compute, fused path, 2 batch tiles (+ core-split stats pass):
    #    tight structural check of affine/pad/tiling/phase logic.
    p32 = prepare_params(raw, compute_dtype=jnp.float32)
    out_f32 = jax.block_until_ready(prediction_head(x, p32, tile_n=128))
    assert out_f32.shape == (N, D) and out_f32.dtype == x.dtype
    assert jnp.allclose(out_f32, ref, atol=1e-3, rtol=1e-3), "fused f32 mismatch"

    # 2) bf16 MXU path (production default tiling), bf16 output.
    pbf16 = prepare_params(raw, compute_dtype=jnp.bfloat16)
    out_bf16 = jax.block_until_ready(
        prediction_head(x, pbf16, out_dtype=jnp.bfloat16))
    assert out_bf16.shape == (N, D)
    err = float(jnp.max(jnp.abs(out_bf16.astype(jnp.float32) - ref)))
    assert err < 5e-2, f"bf16 path mismatch: max abs err {err}"

    # 3) unfused fallback path (taken automatically when N*HP exceeds VMEM).
    out_uf = jax.block_until_ready(
        prediction_head(x, p32, tile_n=128, force_unfused=True))
    assert jnp.allclose(out_uf, ref, atol=1e-3, rtol=1e-3), "unfused mismatch"

    # 4) ragged batch (N not a multiple of the tile) exercises pad-row masking.
    xr = x[:100]
    ref_r = _reference(xr, raw)
    out_r = jax.block_until_ready(prediction_head(xr, p32, tile_n=128))
    assert out_r.shape == (100, D)
    assert jnp.allclose(out_r, ref_r, atol=1e-3, rtol=1e-3), "ragged mismatch"

    print("KERNEL_OK")
</pallas_src>

<mosaic_0001>
module attributes {stable_mosaic.version = 11 : i64} {
  func.func @_x_stats_kernel(%arg0: i32, %arg1: i32, %arg2: memref<128x128xf32, #tpu.memory_space<vmem>>, %arg3: memref<8x128xf32, #tpu.memory_space<vmem>>, %arg4: memref<8x128xf32, #tpu.memory_space<vmem>>) attributes {dimension_semantics = [#tpu.dimension_semantics<parallel>, #tpu.dimension_semantics<arbitrary>], iteration_bounds = array<i64: 2, 1>, scalar_prefetch = 0 : i64, scratch_operands = 0 : i64, tpu.core_type = #tpu.core_type<tc>, window_params = [{transform_indices = @transform_0, window_bounds = array<i64: 128, 128>}, {transform_indices = @transform_1, window_bounds = array<i64: 8, 128>}, {transform_indices = @transform_2, window_bounds = array<i64: 8, 128>}]} {
    %c0_i32 = arith.constant 0 : i32
    %0 = arith.cmpi eq, %arg1, %c0_i32 : i32
    %1 = arith.extui %0 : i1 to i32
    %c0_i32_0 = arith.constant 0 : i32
    %2 = arith.cmpi ne, %1, %c0_i32_0 : i32
    scf.if %2 {
      %cst_11 = arith.constant 0.000000e+00 : f32
      %14 = vector.broadcast %cst_11 : f32 to vector<8x128xf32>
      %c0_12 = arith.constant 0 : index
      %c0_13 = arith.constant 0 : index
      %15 = vector.load %arg3[%c0_12, %c0_13] : memref<8x128xf32, #tpu.memory_space<vmem>>, vector<8x128xf32>
      tpu.vector_store %arg3[%c0_12, %c0_13], %14 {strides = array<i32>} : memref<8x128xf32, #tpu.memory_space<vmem>>, vector<8x128xf32>,
      %cst_14 = arith.constant 0.000000e+00 : f32
      %16 = vector.broadcast %cst_14 : f32 to vector<8x128xf32>
      %c0_15 = arith.constant 0 : index
      %c0_16 = arith.constant 0 : index
      %17 = vector.load %arg4[%c0_15, %c0_16] : memref<8x128xf32, #tpu.memory_space<vmem>>, vector<8x128xf32>
      tpu.vector_store %arg4[%c0_15, %c0_16], %16 {strides = array<i32>} : memref<8x128xf32, #tpu.memory_space<vmem>>, vector<8x128xf32>,
    } else {
    }
    %c0 = arith.constant 0 : index
    %c0_1 = arith.constant 0 : index
    %3 = vector.load %arg2[%c0, %c0_1] : memref<128x128xf32, #tpu.memory_space<vmem>>, vector<128x128xf32>
    %4 = vector.shape_cast %3 : vector<128x128xf32> to vector<16x8x128xf32>
    %c0_2 = arith.constant 0 : index
    %c0_3 = arith.constant 0 : index
    %5 = vector.load %arg3[%c0_2, %c0_3] : memref<8x128xf32, #tpu.memory_space<vmem>>, vector<8x128xf32>
    %cst = arith.constant dense<0.000000e+00> : vector<8x128xf32>
    %6 = vector.multi_reduction <add>, %4, %cst [0] : vector<16x8x128xf32> to vector<8x128xf32>
    %7 = arith.addf %5, %6 : vector<8x128xf32>
    %c0_4 = arith.constant 0 : index
    %c0_5 = arith.constant 0 : index
    %8 = vector.load %arg3[%c0_4, %c0_5] : memref<8x128xf32, #tpu.memory_space<vmem>>, vector<8x128xf32>
    tpu.vector_store %arg3[%c0_4, %c0_5], %7 {strides = array<i32>} : memref<8x128xf32, #tpu.memory_space<vmem>>, vector<8x128xf32>,
    %c0_6 = arith.constant 0 : index
    %c0_7 = arith.constant 0 : index
    %9 = vector.load %arg4[%c0_6, %c0_7] : memref<8x128xf32, #tpu.memory_space<vmem>>, vector<8x128xf32>
    %10 = arith.mulf %4, %4 : vector<16x8x128xf32>
    %cst_8 = arith.constant dense<0.000000e+00> : vector<8x128xf32>
    %11 = vector.multi_reduction <add>, %10, %cst_8 [0] : vector<16x8x128xf32> to vector<8x128xf32>
    %12 = arith.addf %9, %11 : vector<8x128xf32>
    %c0_9 = arith.constant 0 : index
    %c0_10 = arith.constant 0 : index
    %13 = vector.load %arg4[%c0_9, %c0_10] : memref<8x128xf32, #tpu.memory_space<vmem>>, vector<8x128xf32>
    tpu.vector_store %arg4[%c0_9, %c0_10], %12 {strides = array<i32>} : memref<8x128xf32, #tpu.memory_space<vmem>>, vector<8x128xf32>,
    return
  }
  func.func @transform_0(%arg0: i32, %arg1: i32) -> (i32, i32) {
    %c1_i32 = arith.constant 1 : i32
    %0 = arith.muli %arg0, %c1_i32 : i32
    %1 = arith.addi %0, %arg1 : i32
    %c0_i32 = arith.constant 0 : i32
    %c0_i32_0 = arith.constant 0 : i32
    return %1, %c0_i32 : i32, i32
  }
  func.func @transform_1(%arg0: i32, %arg1: i32) -> (i32, i32) {
    %c0_i32 = arith.constant 0 : i32
    %c0_i32_0 = arith.constant 0 : i32
    return %arg0, %c0_i32 : i32, i32
  }
  func.func @transform_2(%arg0: i32, %arg1: i32) -> (i32, i32) {
    %c0_i32 = arith.constant 0 : i32
    %c0_i32_0 = arith.constant 0 : i32
    return %arg0, %c0_i32 : i32, i32
  }
}

module attributes {stable_mosaic.version = 11 : i64} {
  func.func @_fused_fc_kernel(%arg0: i32, %arg1: i32, %arg2: memref<128x128xf32, #tpu.memory_space<vmem>>, %arg3: memref<1x128xf32, #tpu.memory_space<vmem>>, %arg4: memref<1x128xf32, #tpu.memory_space<vmem>>, %arg5: memref<128x128xf32, #tpu.memory_space<vmem>>, %arg6: memref<1x128xf32, #tpu.memory_space<vmem>>, %arg7: memref<1x128xf32, #tpu.memory_space<vmem>>, %arg8: memref<1x128xf32, #tpu.memory_space<vmem>>, %arg9: memref<128x128xf32, #tpu.memory_space<vmem>>, %arg10: memref<1x128xf32, #tpu.memory_space<vmem>>, %arg11: memref<128x128xf32, #tpu.memory_space<vmem>>, %arg12: memref<256x128xf32, #tpu.memory_space<vmem>>, %arg13: memref<8x128xf32, #tpu.memory_space<vmem>>, %arg14: memref<8x128xf32, #tpu.memory_space<vmem>>, %arg15: memref<1x128xf32, #tpu.memory_space<vmem>>, %arg16: memref<1x128xf32, #tpu.memory_space<vmem>>) attributes {dimension_semantics = [#tpu.dimension_semantics<arbitrary>, #tpu.dimension_semantics<arbitrary>], iteration_bounds = array<i64: 2, 2>, scalar_prefetch = 0 : i64, scratch_operands = 5 : i64, tpu.core_type = #tpu.core_type<tc>, window_params = [{transform_indices = @transform_0, window_bounds = array<i64: 128, 128>}, {pipeline_mode = #tpu.pipeline_mode<synchronous>, transform_indices = @transform_1, window_bounds = array<i64: 1, 128>}, {pipeline_mode = #tpu.pipeline_mode<synchronous>, transform_indices = @transform_2, window_bounds = array<i64: 1, 128>}, {pipeline_mode = #tpu.pipeline_mode<synchronous>, transform_indices = @transform_3, window_bounds = array<i64: 128, 128>}, {pipeline_mode = #tpu.pipeline_mode<synchronous>, transform_indices = @transform_4, window_bounds = array<i64: 1, 128>}, {pipeline_mode = #tpu.pipeline_mode<synchronous>, transform_indices = @transform_5, window_bounds = array<i64: 1, 128>}, {pipeline_mode = #tpu.pipeline_mode<synchronous>, transform_indices = @transform_6, window_bounds = array<i64: 1, 128>}, {pipeline_mode = #tpu.pipeline_mode<synchronous>, transform_indices = @transform_7, window_bounds = array<i64: 128, 128>}, {pipeline_mode = #tpu.pipeline_mode<synchronous>, transform_indices = @transform_8, window_bounds = array<i64: 1, 128>}, {transform_indices = @transform_9, window_bounds = array<i64: 128, 128>}]} {
    %c128_i32 = arith.constant 128 : i32
    %0 = arith.muli %arg1, %c128_i32 : i32
    %1 = tpu.assume_multiple %0, 128 : i32
    %c0_i32 = arith.constant 0 : i32
    %2 = arith.cmpi eq, %arg0, %c0_i32 : i32
    %c0_i32_0 = arith.constant 0 : i32
    %3 = arith.cmpi eq, %arg1, %c0_i32_0 : i32
    %4 = arith.andi %2, %3 : i1
    %5 = arith.extui %4 : i1 to i32
    %c0_i32_1 = arith.constant 0 : i32
    %6 = arith.cmpi ne, %5, %c0_i32_1 : i32
    scf.if %6 {
      %cst = arith.constant 0.000000e+00 : f32
      %18 = vector.broadcast %cst : f32 to vector<8x128xf32>
      %c0 = arith.constant 0 : index
      %c0_8 = arith.constant 0 : index
      %19 = vector.load %arg13[%c0, %c0_8] : memref<8x128xf32, #tpu.memory_space<vmem>>, vector<8x128xf32>
      tpu.vector_store %arg13[%c0, %c0_8], %18 {strides = array<i32>} : memref<8x128xf32, #tpu.memory_space<vmem>>, vector<8x128xf32>,
      %cst_9 = arith.constant 0.000000e+00 : f32
      %20 = vector.broadcast %cst_9 : f32 to vector<8x128xf32>
      %c0_10 = arith.constant 0 : index
      %c0_11 = arith.constant 0 : index
      %21 = vector.load %arg14[%c0_10, %c0_11] : memref<8x128xf32, #tpu.memory_space<vmem>>, vector<8x128xf32>
      tpu.vector_store %arg14[%c0_10, %c0_11], %20 {strides = array<i32>} : memref<8x128xf32, #tpu.memory_space<vmem>>, vector<8x128xf32>,
    } else {
    }
    %c0_i32_2 = arith.constant 0 : i32
    %7 = arith.cmpi eq, %arg0, %c0_i32_2 : i32
    %8 = arith.extui %7 : i1 to i32
    %c0_i32_3 = arith.constant 0 : i32
    %9 = arith.cmpi ne, %8, %c0_i32_3 : i32
    scf.if %9 {
      %c0 = arith.constant 0 : index
      %c0_8 = arith.constant 0 : index
      %18 = vector.load %arg2[%c0, %c0_8] : memref<128x128xf32, #tpu.memory_space<vmem>>, vector<128x128xf32>
      %c0_9 = arith.constant 0 : index
      %c0_10 = arith.constant 0 : index
      %19 = vector.load %arg3[%c0_9, %c0_10] : memref<1x128xf32, #tpu.memory_space<vmem>>, vector<1x128xf32>
      %20 = vector.broadcast %19 : vector<1x128xf32> to vector<128x128xf32>
      %21 = arith.mulf %18, %20 : vector<128x128xf32>
      %c0_11 = arith.constant 0 : index
      %c0_12 = arith.constant 0 : index
      %22 = vector.load %arg4[%c0_11, %c0_12] : memref<1x128xf32, #tpu.memory_space<vmem>>, vector<1x128xf32>
      %23 = vector.broadcast %22 : vector<1x128xf32> to vector<128x128xf32>
      %24 = arith.addf %21, %23 : vector<128x128xf32>
      %c0_13 = arith.constant 0 : index
      %c0_14 = arith.constant 0 : index
      %25 = vector.load %arg5[%c0_13, %c0_14] : memref<128x128xf32, #tpu.memory_space<vmem>>, vector<128x128xf32>
      %cst = arith.constant dense<0.000000e+00> : vector<128x128xf32>
      %26 = tpu.matmul %24, %25, %cst {dimension_numbers = #tpu.dot_dimension_numbers<[1], [0], [0], [1], [0, 0, 1, 1], [], []>} : vector<128x128xf32>, vector<128x128xf32>, vector<128x128xf32> -> vector<128x128xf32>
      %c0_15 = arith.constant 0 : index
      %c0_16 = arith.constant 0 : index
      %27 = vector.load %arg6[%c0_15, %c0_16] : memref<1x128xf32, #tpu.memory_space<vmem>>, vector<1x128xf32>
      %28 = vector.broadcast %27 : vector<1x128xf32> to vector<128x128xf32>
      %29 = arith.addf %26, %28 : vector<128x128xf32>
      %30 = vector.shape_cast %29 : vector<128x128xf32> to vector<16x8x128xf32>
      %c0_17 = arith.constant 0 : index
      %c0_18 = arith.constant 0 : index
      %31 = vector.load %arg13[%c0_17, %c0_18] : memref<8x128xf32, #tpu.memory_space<vmem>>, vector<8x128xf32>
      %cst_19 = arith.constant dense<0.000000e+00> : vector<8x128xf32>
      %32 = vector.multi_reduction <add>, %30, %cst_19 [0] : vector<16x8x128xf32> to vector<8x128xf32>
      %33 = arith.addf %31, %32 : vector<8x128xf32>
      %c0_20 = arith.constant 0 : index
      %c0_21 = arith.constant 0 : index
      %34 = vector.load %arg13[%c0_20, %c0_21] : memref<8x128xf32, #tpu.memory_space<vmem>>, vector<8x128xf32>
      tpu.vector_store %arg13[%c0_20, %c0_21], %33 {strides = array<i32>} : memref<8x128xf32, #tpu.memory_space<vmem>>, vector<8x128xf32>,
      %c0_22 = arith.constant 0 : index
      %c0_23 = arith.constant 0 : index
      %35 = vector.load %arg14[%c0_22, %c0_23] : memref<8x128xf32, #tpu.memory_space<vmem>>, vector<8x128xf32>
      %36 = arith.mulf %30, %30 : vector<16x8x128xf32>
      %cst_24 = arith.constant dense<0.000000e+00> : vector<8x128xf32>
      %37 = vector.multi_reduction <add>, %36, %cst_24 [0] : vector<16x8x128xf32> to vector<8x128xf32>
      %38 = arith.addf %35, %37 : vector<8x128xf32>
      %c0_25 = arith.constant 0 : index
      %c0_26 = arith.constant 0 : index
      %39 = vector.load %arg14[%c0_25, %c0_26] : memref<8x128xf32, #tpu.memory_space<vmem>>, vector<8x128xf32>
      tpu.vector_store %arg14[%c0_25, %c0_26], %38 {strides = array<i32>} : memref<8x128xf32, #tpu.memory_space<vmem>>, vector<8x128xf32>,
      %40 = arith.index_cast %1 : i32 to index
      %c0_27 = arith.constant 0 : index
      %41 = vector.load %arg12[%40, %c0_27] : memref<256x128xf32, #tpu.memory_space<vmem>>, vector<128x128xf32>
      tpu.vector_store %arg12[%40, %c0_27], %29 {strides = array<i32>} : memref<256x128xf32, #tpu.memory_space<vmem>>, vector<128x128xf32>,
    } else {
    }
    %c1_i32 = arith.constant 1 : i32
    %10 = arith.cmpi eq, %arg0, %c1_i32 : i32
    %c0_i32_4 = arith.constant 0 : i32
    %11 = arith.cmpi eq, %arg1, %c0_i32_4 : i32
    %12 = arith.andi %10, %11 : i1
    %13 = arith.extui %12 : i1 to i32
    %c0_i32_5 = arith.constant 0 : i32
    %14 = arith.cmpi ne, %13, %c0_i32_5 : i32
    scf.if %14 {
      %c0 = arith.constant 0 : index
      %c0_8 = arith.constant 0 : index
      %18 = vector.load %arg13[%c0, %c0_8] : memref<8x128xf32, #tpu.memory_space<vmem>>, vector<8x128xf32>
      %cst = arith.constant dense<0.000000e+00> : vector<128xf32>
      %19 = vector.multi_reduction <add>, %18, %cst [0] : vector<8x128xf32> to vector<128xf32>
      %20 = vector.shape_cast %19 : vector<128xf32> to vector<1x128xf32>
      %cst_9 = arith.constant 3.906250e-03 : f32
      %21 = vector.broadcast %cst_9 : f32 to vector<1x128xf32>
      %22 = arith.mulf %20, %21 : vector<1x128xf32>
      %c0_10 = arith.constant 0 : index
      %c0_11 = arith.constant 0 : index
      %23 = vector.load %arg14[%c0_10, %c0_11] : memref<8x128xf32, #tpu.memory_space<vmem>>, vector<8x128xf32>
      %cst_12 = arith.constant dense<0.000000e+00> : vector<128xf32>
      %24 = vector.multi_reduction <add>, %23, %cst_12 [0] : vector<8x128xf32> to vector<128xf32>
      %25 = vector.shape_cast %24 : vector<128xf32> to vector<1x128xf32>
      %cst_13 = arith.constant 3.906250e-03 : f32
      %26 = vector.broadcast %cst_13 : f32 to vector<1x128xf32>
      %27 = arith.mulf %25, %26 : vector<1x128xf32>
      %28 = arith.mulf %22, %22 : vector<1x128xf32>
      %29 = arith.subf %27, %28 : vector<1x128xf32>
      %cst_14 = arith.constant 0.000000e+00 : f32
      %30 = vector.broadcast %cst_14 : f32 to vector<1x128xf32>
      %31 = arith.maximumf %29, %30 : vector<1x128xf32>
      %c0_15 = arith.constant 0 : index
      %c0_16 = arith.constant 0 : index
      %32 = vector.load %arg7[%c0_15, %c0_16] : memref<1x128xf32, #tpu.memory_space<vmem>>, vector<1x128xf32>
      %cst_17 = arith.constant 9.99999974E-6 : f32
      %33 = vector.broadcast %cst_17 : f32 to vector<1x128xf32>
      %34 = arith.addf %31, %33 : vector<1x128xf32>
      %35 = math.rsqrt %34 : vector<1x128xf32>
      %36 = arith.mulf %32, %35 : vector<1x128xf32>
      %c0_18 = arith.constant 0 : index
      %c0_19 = arith.constant 0 : index
      %37 = vector.load %arg15[%c0_18, %c0_19] : memref<1x128xf32, #tpu.memory_space<vmem>>, vector<1x128xf32>
      tpu.vector_store %arg15[%c0_18, %c0_19], %36 {strides = array<i32>} : memref<1x128xf32, #tpu.memory_space<vmem>>, vector<1x128xf32>,
      %c0_20 = arith.constant 0 : index
      %c0_21 = arith.constant 0 : index
      %38 = vector.load %arg8[%c0_20, %c0_21] : memref<1x128xf32, #tpu.memory_space<vmem>>, vector<1x128xf32>
      %39 = arith.mulf %22, %36 : vector<1x128xf32>
      %40 = arith.subf %38, %39 : vector<1x128xf32>
      %c0_22 = arith.constant 0 : index
      %c0_23 = arith.constant 0 : index
      %41 = vector.load %arg16[%c0_22, %c0_23] : memref<1x128xf32, #tpu.memory_space<vmem>>, vector<1x128xf32>
      tpu.vector_store %arg16[%c0_22, %c0_23], %40 {strides = array<i32>} : memref<1x128xf32, #tpu.memory_space<vmem>>, vector<1x128xf32>,
    } else {
    }
    %c1_i32_6 = arith.constant 1 : i32
    %15 = arith.cmpi eq, %arg0, %c1_i32_6 : i32
    %16 = arith.extui %15 : i1 to i32
    %c0_i32_7 = arith.constant 0 : i32
    %17 = arith.cmpi ne, %16, %c0_i32_7 : i32
    scf.if %17 {
      %18 = arith.index_cast %1 : i32 to index
      %c0 = arith.constant 0 : index
      %19 = vector.load %arg12[%18, %c0] : memref<256x128xf32, #tpu.memory_space<vmem>>, vector<128x128xf32>
      %c0_8 = arith.constant 0 : index
      %c0_9 = arith.constant 0 : index
      %20 = vector.load %arg15[%c0_8, %c0_9] : memref<1x128xf32, #tpu.memory_space<vmem>>, vector<1x128xf32>
      %21 = vector.broadcast %20 : vector<1x128xf32> to vector<128x128xf32>
      %22 = arith.mulf %19, %21 : vector<128x128xf32>
      %c0_10 = arith.constant 0 : index
      %c0_11 = arith.constant 0 : index
      %23 = vector.load %arg16[%c0_10, %c0_11] : memref<1x128xf32, #tpu.memory_space<vmem>>, vector<1x128xf32>
      %24 = vector.broadcast %23 : vector<1x128xf32> to vector<128x128xf32>
      %25 = arith.addf %22, %24 : vector<128x128xf32>
      %cst = arith.constant 0.000000e+00 : f32
      %26 = vector.broadcast %cst : f32 to vector<128x128xf32>
      %27 = arith.maximumf %25, %26 : vector<128x128xf32>
      %c0_12 = arith.constant 0 : index
      %c0_13 = arith.constant 0 : index
      %28 = vector.load %arg9[%c0_12, %c0_13] : memref<128x128xf32, #tpu.memory_space<vmem>>, vector<128x128xf32>
      %cst_14 = arith.constant dense<0.000000e+00> : vector<128x128xf32>
      %29 = tpu.matmul %27, %28, %cst_14 {dimension_numbers = #tpu.dot_dimension_numbers<[1], [0], [0], [1], [0, 0, 1, 1], [], []>} : vector<128x128xf32>, vector<128x128xf32>, vector<128x128xf32> -> vector<128x128xf32>
      %c0_15 = arith.constant 0 : index
      %c0_16 = arith.constant 0 : index
      %30 = vector.load %arg10[%c0_15, %c0_16] : memref<1x128xf32, #tpu.memory_space<vmem>>, vector<1x128xf32>
      %31 = vector.broadcast %30 : vector<1x128xf32> to vector<128x128xf32>
      %32 = arith.addf %29, %31 : vector<128x128xf32>
      %c0_17 = arith.constant 0 : index
      %c0_18 = arith.constant 0 : index
      %33 = vector.load %arg11[%c0_17, %c0_18] : memref<128x128xf32, #tpu.memory_space<vmem>>, vector<128x128xf32>
      tpu.vector_store %arg11[%c0_17, %c0_18], %32 {strides = array<i32>} : memref<128x128xf32, #tpu.memory_space<vmem>>, vector<128x128xf32>,
    } else {
    }
    return
  }
  func.func @transform_0(%arg0: i32, %arg1: i32) -> (i32, i32) {
    %c1_i32 = arith.constant 1 : i32
    %0 = arith.subi %c1_i32, %arg0 : i32
    %1 = arith.muli %arg1, %0 : i32
    %c1_i32_0 = arith.constant 1 : i32
    %2 = arith.muli %c1_i32_0, %arg0 : i32
    %3 = arith.addi %1, %2 : i32
    %c0_i32 = arith.constant 0 : i32
    %c0_i32_1 = arith.constant 0 : i32
    return %3, %c0_i32 : i32, i32
  }
  func.func @transform_1(%arg0: i32, %arg1: i32) -> (i32, i32) {
    %c0_i32 = arith.constant 0 : i32
    %c0_i32_0 = arith.constant 0 : i32
    %c0_i32_1 = arith.constant 0 : i32
    return %c0_i32, %c0_i32_0 : i32, i32
  }
  func.func @transform_2(%arg0: i32, %arg1: i32) -> (i32, i32) {
    %c0_i32 = arith.constant 0 : i32
    %c0_i32_0 = arith.constant 0 : i32
    %c0_i32_1 = arith.constant 0 : i32
    return %c0_i32, %c0_i32_0 : i32, i32
  }
  func.func @transform_3(%arg0: i32, %arg1: i32) -> (i32, i32) {
    %c0_i32 = arith.constant 0 : i32
    %c0_i32_0 = arith.constant 0 : i32
    %c0_i32_1 = arith.constant 0 : i32
    return %c0_i32, %c0_i32_0 : i32, i32
  }
  func.func @transform_4(%arg0: i32, %arg1: i32) -> (i32, i32) {
    %c0_i32 = arith.constant 0 : i32
    %c0_i32_0 = arith.constant 0 : i32
    %c0_i32_1 = arith.constant 0 : i32
    return %c0_i32, %c0_i32_0 : i32, i32
  }
  func.func @transform_5(%arg0: i32, %arg1: i32) -> (i32, i32) {
    %c0_i32 = arith.constant 0 : i32
    %c0_i32_0 = arith.constant 0 : i32
    %c0_i32_1 = arith.constant 0 : i32
    return %c0_i32, %c0_i32_0 : i32, i32
  }
  func.func @transform_6(%arg0: i32, %arg1: i32) -> (i32, i32) {
    %c0_i32 = arith.constant 0 : i32
    %c0_i32_0 = arith.constant 0 : i32
    %c0_i32_1 = arith.constant 0 : i32
    return %c0_i32, %c0_i32_0 : i32, i32
  }
  func.func @transform_7(%arg0: i32, %arg1: i32) -> (i32, i32) {
    %c0_i32 = arith.constant 0 : i32
    %c0_i32_0 = arith.constant 0 : i32
    %c0_i32_1 = arith.constant 0 : i32
    return %c0_i32, %c0_i32_0 : i32, i32
  }
  func.func @transform_8(%arg0: i32, %arg1: i32) -> (i32, i32) {
    %c0_i32 = arith.constant 0 : i32
    %c0_i32_0 = arith.constant 0 : i32
    %c0_i32_1 = arith.constant 0 : i32
    return %c0_i32, %c0_i32_0 : i32, i32
  }
  func.func @transform_9(%arg0: i32, %arg1: i32) -> (i32, i32) {
    %0 = arith.muli %arg1, %arg0 : i32
    %c0_i32 = arith.constant 0 : i32
    %c0_i32_0 = arith.constant 0 : i32
    return %0, %c0_i32 : i32, i32
  }
}

</mosaic_0001>

<bundles_post_ra>
// kernel: prediction_head.2
= control target key start
LH: loop header
LB: loop body
LE: loop exit
PB: predicated region body
PF: predicated region fallthrough
CT: control target
= control target key end

     0   :  { %8 = vsyncpa [#allocation3], 0  ;;  %s686_s0 = inlined_call_operand.hbm [shape: f32[256,128], index: 0, kind: input, shape index: {}]   ;;  %s687_s1 = inlined_call_operand.vmem [shape: f32[16,128], index: 1, kind: output, shape index: {0}]   ;;  %s688_s2 = inlined_call_operand.vmem [shape: f32[16,128], index: 2, kind: output, shape index: {1}]  }
   0x1   :  { %10 = vsyncpa [#allocation3 + $0x1], 0  ;;  %s541_s9 = smov 0   ;;  %s543_s10 = smov 0  }
   0x2   :  { %s545_s11 = smov 0   ;;  %s547_s12 = smov 0  }
   0x3   :  { %s549_s13 = smov 0   ;;  %s551_s14 = smov 0  }
   0x4 LB: > { %s369_s15 = sadd.s32 4294967295, %s521_s14   ;;  %s28_s16 = sadd.s32 1, %s517_s13  ;;  %s521_s14 = sphi %s551_s14, %s16_s14   ;;  %s517_s13 = sphi %s549_s13, %s696_s13   ;;  %s513_s12 = sphi %s547_s12, %s695_s12   ;;  %s509_s11 = sphi %s545_s11, %s694_s11   ;;  %s505_s10 = sphi %s543_s10, %s693_s10   ;;  %s501_s9 = sphi %s541_s9, %s692_s9  }
   0x5   : > { %p30_p0 = scmp.ge.s32.totalorder %s28_s16, 2  ;;  %s37_s17 = sadd.s32 1, %s509_s11 }
   0x6   : > { %p44_p1 = scmp.ne.s32.totalorder %s509_s11, %s505_s10  ;;  %p45_p2 = scmp.eq.s32.totalorder %s521_s14, 0 }
   0x7   : > { %s698_s16 = smov (%p30_p0, %s28_s16), 0  ;;  %p50_p4 = scmp.ne.s32.totalorder %s505_s10, %s501_s9 }
   0x8   : > { %p577_p3 = por %p45_p2, %p44_p1  ;;  %s34_s19 = ssub.s32 %s517_s13, %s698_s16 }
   0x9   : > { %p51_p5 = scmp.eq.s32.totalorder %s369_s15, 0  ;;  %p35_p6 = scmp.eq.s32.totalorder %s34_s19, 0 }
   0xa   : > { %p389_p8 = scmp.lt.s32.totalorder %s521_s14, 2  ;;  %s126_s22 = sand.u32 1, %s509_s11  }
   0xb   : > { %p584_p7 = por %p51_p5, %p50_p4  ;;  %s382_s23 = sshll.u32 %s517_s13, 11 }
   0xc   : > { %s590_s21 = scalar_select %p35_p6, %s509_s11, %s37_s17  }
   0xd   : > { %s373_s24 = sshll.u32 %s126_s22, 7  ;;  %s597_s27 = scalar_lea.hbm %s686_s0, %s382_s23 }
   0xe   : > { %s130_s28 = scalar_lea.vmem [#allocation2], %s373_s24  ;;  %p601_p9 = pnand %p389_p8, %p577_p3 }
   0xf   : > { %s138_s29 = sshll.u32 %s130_s28, 4  ;;  %s607_s3 = scalar_lea.sflag [#allocation3], %s126_s22  ;;  %s605_s29 = int_to_ptr.vmem [resolvable:$true] %s138_s29 }
  0x10   : > { %s441_s4 = scalar_lea.hbm %s597_s27, 2048  ;;  %p443_p11 = pneg %p601_p9 }
  0x11   : > { %p442_p10 = scmp.ne.s32.totalorder %s597_s27, %s441_s4  ;;  %s446_s7 = scalar_lea.hbm %s686_s0, 4096 }
  0x12   : > { %p447_p0 = scmp.lt.u32.totalorder %s597_s27, %s686_s0  ;;  %p448_p1 = scmp.lt.u32.totalorder %s446_s7, %s441_s4 }
  0x13   : > { %p444_p12 = pnand %p443_p11, %p442_p10  ;;  %p450_p3 = scmp.lt.u32.totalorder %s441_s4, %s597_s27 }
  0x14   : > { %p449_p2 = por %p448_p1, %p447_p0 }
  0x15   : > { %p445_p13 = pneg %p444_p12 }
  0x16   : > { %p451_p4 = por %p450_p3, %p449_p2 }
  0x18   : > { %p452_p5 = pnand %p451_p4, %p445_p13 }
  0x1a   : > { %455 = shalt.err (!%p452_p5)
}
  0x1b   : > { %s456_s15 = scalar_lea.vmem %s605_s29, 2048  ;;  %s523_s17 = smov [#allocation2]  }
  0x1c   : > { %p457_p6 = scmp.ne.s32.totalorder %s605_s29, %s456_s15  ;;  %s461_s18 = sshll.u32 %s523_s17, 4  ;;  %s462_s18 = int_to_ptr.vmem [resolvable:$false] %s461_s18 }
  0x1d   : > { %s463_s19 = scalar_lea.vmem %s462_s18, 4096  ;;  %p464_p12 = scmp.lt.s32.totalorder %s605_s29, %s462_s18 }
  0x1e   : > { %p459_p8 = pnand %p457_p6, %p443_p11  ;;  %p465_p0 = scmp.lt.s32.totalorder %s463_s19, %s456_s15 }
  0x20   : > { %p460_p10 = pneg %p459_p8  ;;  %p466_p1 = por %p465_p0, %p464_p12 }
  0x22   : > { %p467_p2 = pnand %p466_p1, %p460_p10 }
  0x24   : > { %470 = shalt.err (!%p467_p2)
}
  0x25   : > { %s524_s22 = smov 128   ;;  %s525_s23 = smov 8  }
  0x26   : > { %388 = dma.hbm_to_vmem [thread:$0]  (!%p601_p9), %s597_s27, 2048, %s605_s29, %s607_s3, %s524_s22, %s524_s22, %s525_s23  }
  0x27   : > { %p376_p11 = scmp.ge.s32.totalorder %s521_s14, 1  ;;  %p146_p13 = scmp.lt.s32.totalorder %s521_s14, 3 }
  0x29   : > { %p147_p3 = pnand %p376_p11, %p146_p13 }
  0x2a   : > { %s152_s24 = sand.u32 (!%p147_p3), 1, %s505_s10  }
  0x2b   : > { %150 = sbr.rel (%p147_p3) target bundleno = 85 (0x55), region = 24  ;;  %s377_s25 = sshll.u32 (!%p147_p3), %s152_s24, 7 }
  0x2c   : > { %s153_s26 = scalar_lea.sflag (!%p147_p3), [#allocation3], %s152_s24  ;;  %s638_s28 = scalar_lea.vmem (!%p147_p3), [#allocation2], %s377_s25 }
  0x32   : > { %496 = dma.done.wait (%p584_p7), %s153_s26, 2048  }
  0x33   : > { %498 = vsyncadd (%p584_p7), %s153_s26, 4294965248  ;;  %v196_v0 = vld [vmem:[%s638_s28] sm:$0xff]  ;;  %v197_v1 = vld [vmem:[%s638_s28 + $0x8] sm:$0xff]  ;;  %p182_p7 = scmp.lt.s32.totalorder %s513_s12, 1 }
  0x34   : > { %v198_v2 = vld [vmem:[%s638_s28 + $0x10] sm:$0xff]  ;;  %v199_v3 = vld [vmem:[%s638_s28 + $0x18] sm:$0xff]  ;;  %v213_v4 = vadd.f32 %v197_v1, %v196_v0  ;;  %v231_v5 = vmul.f32 %v196_v0, %v196_v0  ;;  %v232_v6 = vmul.f32 %v197_v1, %v197_v1  ;;  %v200_v8 = vld [vmem:[%s638_s28 + $0x20] sm:$0xff] }
  0x35   : > { %v233_v7 = vmul.f32 %v198_v2, %v198_v2  ;;  %v234_v10 = vmul.f32 %v199_v3, %v199_v3  ;;  %v201_v12 = vld [vmem:[%s638_s28 + $0x28] sm:$0xff]  ;;  %v235_v14 = vmul.f32 %v200_v8, %v200_v8  ;;  %v202_v16 = vld [vmem:[%s638_s28 + $0x30] sm:$0xff]  ;;  %v203_v20 = vld [vmem:[%s638_s28 + $0x38] sm:$0xff]  ;;  %s700_s12 = smov (!%p182_p7, %s513_s12), 1 }
  0x36   : > { %v214_v9 = vadd.f32 %v213_v4, %v198_v2  ;;  %v247_v11 = vadd.f32 %v232_v6, %v231_v5  ;;  %v236_v18 = vmul.f32 %v201_v12, %v201_v12  ;;  %v237_v22 = vmul.f32 %v202_v16, %v202_v16  ;;  %v204_v24 = vld [vmem:[%s638_s28 + $0x40] sm:$0xff]  ;;  %v205_v28 = vld [vmem:[%s638_s28 + $0x48] sm:$0xff]  ;;  %v206_v32 = vld [vmem:[%s638_s28 + $0x50] sm:$0xff]  ;;  %s378_s20 = sshll.u32 %s700_s12, 3 }
  0x37   : > { %v238_v26 = vmul.f32 %v203_v20, %v203_v20  ;;  %v239_v30 = vmul.f32 %v204_v24, %v204_v24  ;;  %v240_v34 = vmul.f32 %v205_v28, %v205_v28  ;;  %v207_v36 = vld [vmem:[%s638_s28 + $0x58] sm:$0xff]  ;;  %v241_v38 = vmul.f32 %v206_v32, %v206_v32  ;;  %v208_v40 = vld [vmem:[%s638_s28 + $0x60] sm:$0xff]  ;;  %v209_v44 = vld [vmem:[%s638_s28 + $0x68] sm:$0xff]  ;;  %s185_s30 = scalar_lea.vmem %s687_s1, %s378_s20  ;;  %s189_s5 = scalar_lea.vmem %s688_s2, %s378_s20 }
  0x38   : > { %v215_v13 = vadd.f32 %v214_v9, %v199_v3  ;;  %v248_v15 = vadd.f32 %v247_v11, %v233_v7  ;;  %v242_v42 = vmul.f32 %v207_v36, %v207_v36  ;;  %v243_v46 = vmul.f32 %v208_v40, %v208_v40  ;;  %v210_v48 = vld [vmem:[%s638_s28 + $0x70] sm:$0xff]  ;;  %v211_v52 = vld [vmem:[%s638_s28 + $0x78] sm:$0xff] }
  0x39   : > { %v244_v50 = vmul.f32 %v209_v44, %v209_v44  ;;  %v245_v54 = vmul.f32 %v210_v48, %v210_v48  ;;  %v246_v57 = vmul.f32 %v211_v52, %v211_v52 }
  0x3a   : > { %v216_v17 = vadd.f32 %v215_v13, %v200_v8  ;;  %v249_v19 = vadd.f32 %v248_v15, %v234_v10 }
  0x3c   : > { %v217_v21 = vadd.f32 %v216_v17, %v201_v12  ;;  %v250_v23 = vadd.f32 %v249_v19, %v235_v14 }
  0x3e   : > { %v218_v25 = vadd.f32 %v217_v21, %v202_v16  ;;  %v251_v27 = vadd.f32 %v250_v23, %v236_v18 }
  0x40   : > { %v219_v29 = vadd.f32 %v218_v25, %v203_v20  ;;  %v252_v31 = vadd.f32 %v251_v27, %v237_v22 }
  0x42   : > { %v220_v33 = vadd.f32 %v219_v29, %v204_v24  ;;  %v253_v35 = vadd.f32 %v252_v31, %v238_v26 }
  0x44   : > { %v221_v37 = vadd.f32 %v220_v33, %v205_v28  ;;  %v254_v39 = vadd.f32 %v253_v35, %v239_v30 }
  0x46   : > { %v222_v41 = vadd.f32 %v221_v37, %v206_v32  ;;  %v255_v43 = vadd.f32 %v254_v39, %v240_v34 }
  0x48   : > { %v223_v45 = vadd.f32 %v222_v41, %v207_v36  ;;  %v256_v47 = vadd.f32 %v255_v43, %v241_v38 }
  0x4a   : > { %v224_v49 = vadd.f32 %v223_v45, %v208_v40  ;;  %v257_v51 = vadd.f32 %v256_v47, %v242_v42 }
  0x4c   : > { %v225_v53 = vadd.f32 %v224_v49, %v209_v44  ;;  %v258_v55 = vadd.f32 %v257_v51, %v243_v46 }
  0x4e   : > { %v226_v56 = vadd.f32 %v225_v53, %v210_v48  ;;  %v259_v58 = vadd.f32 %v258_v55, %v244_v50 }
  0x50   : > { %v227_v59 = vadd.f32 %v226_v56, %v211_v52  ;;  %v260_v60 = vadd.f32 %v259_v58, %v245_v54 }
  0x52   : > { %v261_v61 = vadd.f32 %v260_v60, %v246_v57  ;;  %229 = vst [vmem:[%s185_s30] sm:$0xff] %v227_v59 }
  0x54   : > { %263 = vst [vmem:[%s189_s5] sm:$0xff] %v261_v61 }
  0x55 PF: > { %s16_s14 = sadd.s32 1, %s521_s14   ;;  %s692_s9 = smov %s505_s10 }
  0x56   : > { %p13_p9 = scmp.ge.s32.totalorder %s16_s14, 4   ;;  %s693_s10 = smov %s509_s11 }
  0x57   : > { %s694_s11 = smov %s590_s21  ;;  %s695_s12 = smov %s517_s13 }
  0x58   : > { %s696_s13 = smov %s698_s16  ;;  %15 = sbr.rel (!%p13_p9) target bundleno = 4 (0x4), region = 80 }
  0x5f   :  { %297 = vsyncpa [#allocation3], 1 }
  0x60   :  { %299 = vsyncpa [#allocation3 + $0x1], 1 }

// kernel: prediction_head.3
= control target key start
LH: loop header
LB: loop body
LE: loop exit
PB: predicated region body
PF: predicated region fallthrough
CT: control target
= control target key end

     0   :  { %14 = vsyncpa [#allocation8], 0  ;;  %s2140_s0 = inlined_call_operand.vmem [shape: f32[256,128], index: 0, kind: input, shape index: {}]   ;;  %s2141_s1 = inlined_call_operand.vmem [shape: f32[1,128], index: 1, kind: input, shape index: {}]   ;;  %s2142_s2 = inlined_call_operand.vmem [shape: f32[1,128], index: 2, kind: input, shape index: {}]   ;;  %s2143_s3 = inlined_call_operand.hbm [shape: f32[128,128], index: 3, kind: input, shape index: {}]   ;;  %s2144_s4 = inlined_call_operand.vmem [shape: f32[1,128], index: 4, kind: input, shape index: {}]   ;;  %s2145_s5 = inlined_call_operand.vmem [shape: f32[1,128], index: 5, kind: input, shape index: {}]   ;;  %s2146_s6 = inlined_call_operand.vmem [shape: f32[1,128], index: 6, kind: input, shape index: {}]   ;;  %s2147_s7 = inlined_call_operand.hbm [shape: f32[128,128], index: 7, kind: input, shape index: {}]   ;;  %s2148_s8 = inlined_call_operand.vmem [shape: f32[1,128], index: 8, kind: input, shape index: {}]   ;;  %s2149_s9 = inlined_call_operand.hbm [shape: f32[256,128], index: 9, kind: output, shape index: {}]  }
   0x1   :  { %15 = vsyncpa [#allocation11], 0 }
   0x2   :  { %16 = vsyncpa [#allocation9], 0 }
   0x3   :  { %18 = vsyncpa [#allocation9 + $0x1], 0  ;;  %s1740_s30 = smov 0   ;;  %s1742_s10 = smov 0  }
   0x4   :  { %s1744_s11 = smov 0   ;;  %s1746_s12 = smov 0  }
   0x5   :  { %s1748_s13 = smov 0   ;;  %s1750_s14 = smov 0  }
   0x6   :  { %s1752_s15 = smov 0   ;;  %s1754_s16 = smov 0  }
   0x7 LB: > { %2161 = sst [smem:[#allocation16_spill]] %s1652_s30  ;;  %s1124_s17 = sadd.s32 4294967295, %s1680_s16   ;;  %s1680_s16 = sphi %s1754_s16, %s24_s16   ;;  %s1676_s15 = sphi %s1752_s15, %s2185_s15   ;;  %s1672_s14 = sphi %s1750_s14, %s2184_s14   ;;  %s1668_s13 = sphi %s1748_s13, %s2189_s13   ;;  %s1664_s12 = sphi %s1746_s12, %s2188_s12   ;;  %s1660_s11 = sphi %s1744_s11, %s2181_s11   ;;  %s1656_s10 = sphi %s1742_s10, %s2187_s10   ;;  %s1652_s30 = sphi %s1740_s30, %s2186_s30  }
   0x8   : > { %2162 = sst [smem:[#allocation17_spill]] %s1660_s11  ;;  %s1125_s18 = sadd.s32 4294967294, %s1680_s16  }
   0x9   : > { %2163 = sst [smem:[#allocation18_spill]] %s1672_s14  ;;  %s33_s19 = sadd.s32 1, %s1672_s14 }
   0xa   : > { %2164 = sst [smem:[#allocation19_spill]] %s1676_s15  ;;  %s36_s20 = sadd.s32 1, %s1676_s15 }
   0xb   : > { %p34_p0 = scmp.ge.s32.totalorder %s33_s19, 2  ;;  %s240_s21 = smul.u32 %s1672_s14, %s1676_s15 }
   0xc   : > { %s245_s22 = sadd.s32 1, %s1660_s11  ;;  %p255_p1 = scmp.ne.s32.totalorder %s1660_s11, %s1656_s10 }
   0xd   : > { %s2191_s19 = smov (%p34_p0, %s33_s19), 0  ;;  %s2193_s20 = smov (!%p34_p0, %s36_s20), %s1676_s15 }
   0xe   : > { %2165 = sst [smem:[#allocation20_spill]] %s2191_s19  ;;  %p256_p2 = scmp.eq.s32.totalorder %s1124_s17, 3 }
   0xf   : > { %p261_p3 = scmp.ne.s32.totalorder %s1656_s10, %s1652_s30  ;;  %p38_p4 = scmp.ge.s32.totalorder %s2193_s20, 2 }
  0x10   : > { %p262_p5 = scmp.eq.s32.totalorder %s1125_s18, 3  ;;  %p1794_p6 = por %p256_p2, %p255_p1 }
  0x11   : > { %p1126_p7 = scmp.ge.s32.totalorder %s1680_s16, 1  ;;  %s2195_s20 = smov (%p38_p4, %s2193_s20), 0 }
  0x12   : > { %s2166_s23 = scalar_select %p1794_p6, 1, 0 }
  0x13   : > { %2167 = sst [smem:[#allocation21_spill]] %s2195_s20  ;;  %p1801_p8 = por %p262_p5, %p261_p3 }
  0x14   : > { %p269_p9 = scmp.lt.s32.totalorder %s1680_s16, 5  ;;  %s241_s25 = smul.u32 %s2195_s20, %s2191_s19 }
  0x15   : > { %s2168_s24 = scalar_select %p1801_p8, 1, 0 }
  0x16   : > { %p1808_p10 = pnand %p1126_p7, %p269_p9  ;;  %p1812_p11 = scmp.eq.s32.totalorder %s1124_s17, 0 }
  0x17   : > { %2169 = sst [smem:[#allocation22_spill]] %s2168_s24  ;;  %s242_s28 = ssub.s32 %s240_s21, %s241_s25 }
  0x18   : > { %s2170_s26 = scalar_select %p1808_p10, 1, 0 }
  0x19   : > { %s2171_s27 = scalar_select %p1812_p11, 1, 0 }
  0x1a   : > { %p243_p12 = scmp.eq.s32.totalorder %s242_s28, 0  ;;  %p1433_p13 = pneg %p1808_p10 }
  0x1b   : > { %s1682_s29 = smov [#allocation7]   ;;  %s1683_s17 = smov [#allocation10]  }
  0x1c   : > { %s287_s18 = sshll.u32 %s1682_s29, 4  ;;  %p1823_p0 = pnand %p1812_p11, %p1433_p13  ;;  %s288_s18 = int_to_ptr.vmem [resolvable:$true] %s287_s18 }
  0x1d   : > { %s1819_s15 = scalar_select %p243_p12, %s1660_s11, %s245_s22  }
  0x1e   : > { %s309_s19 = sshll.u32 %s1683_s17, 4  ;;  %s1522_s21 = scalar_lea.hbm %s2143_s3, 2048  ;;  %s310_s19 = int_to_ptr.vmem [resolvable:$true] %s309_s19 }
  0x1f   : > { %2172 = sst [smem:[#allocation23_spill]] %s1819_s15  ;;  %p1523_p1 = scmp.ne.s32.totalorder %s2143_s3, %s1522_s21 }
  0x20   : > { %p1524_p2 = pneg %p1823_p0  ;;  %p1529_p5 = scmp.lt.u32.totalorder %s1522_s21, %s2143_s3 }
  0x22   : > { %p1525_p3 = pnand %p1524_p2, %p1523_p1 }
  0x24   : > { %p1526_p4 = pneg %p1525_p3 }
  0x26   : > { %p1531_p7 = pnand %p1529_p5, %p1526_p4 }
  0x28   : > { %1534 = shalt.err (!%p1531_p7)
}
  0x29   : > { %s1535_s17 = scalar_lea.vmem %s288_s18, 2048  ;;  %p1543_p8 = scmp.lt.s32.totalorder %s288_s18, %s288_s18 }
  0x2a   : > { %p1536_p9 = scmp.ne.s32.totalorder %s288_s18, %s1535_s17  ;;  %p1544_p6 = scmp.lt.s32.totalorder %s1535_s17, %s1535_s17 }
  0x2c   : > { %p1538_p12 = pnand %p1536_p9, %p1524_p2  ;;  %p1545_p11 = por %p1544_p6, %p1543_p8 }
  0x2e   : > { %p1539_p13 = pneg %p1538_p12 }
  0x30   : > { %p1546_p10 = pnand %p1545_p11, %p1539_p13 }
  0x32   : > { %1549 = shalt.err (!%p1546_p10)
}
  0x33   : > { %s1684_s14 = smov 128   ;;  %s1685_s24 = smov 8  }
  0x34   : > { %1436 = dma.hbm_to_vmem [thread:$0]  (!%p1823_p0), %s2143_s3, 2048, %s288_s18, [#allocation8], %s1684_s14, %s1684_s14, %s1685_s24  }
  0x35   : > { %s1550_s29 = scalar_lea.hbm %s2147_s7, 2048 }
  0x36   : > { %p1551_p6 = scmp.ne.s32.totalorder %s2147_s7, %s1550_s29  ;;  %p1557_p11 = scmp.lt.u32.totalorder %s1550_s29, %s2147_s7 }
  0x38   : > { %p1553_p8 = pnand %p1551_p6, %p1524_p2 }
  0x3a   : > { %p1554_p10 = pneg %p1553_p8 }
  0x3c   : > { %p1559_p1 = pnand %p1557_p11, %p1554_p10 }
  0x3e   : > { %1562 = shalt.err (!%p1559_p1)
}
  0x3f   : > { %s1563_s18 = scalar_lea.vmem %s310_s19, 2048  ;;  %p1571_p7 = scmp.lt.s32.totalorder %s310_s19, %s310_s19 }
  0x40   : > { %p1564_p3 = scmp.ne.s32.totalorder %s310_s19, %s1563_s18  ;;  %p1572_p9 = scmp.lt.s32.totalorder %s1563_s18, %s1563_s18 }
  0x42   : > { %p1566_p4 = pnand %p1564_p3, %p1524_p2  ;;  %p1573_p12 = por %p1572_p9, %p1571_p7 }
  0x44   : > { %p1567_p5 = pneg %p1566_p4 }
  0x46   : > { %p1574_p13 = pnand %p1573_p12, %p1567_p5 }
  0x48   : > { %1577 = shalt.err (!%p1574_p13)
}
  0x49   : > { %1439 = dma.hbm_to_vmem [thread:$0]  (!%p1823_p0), %s2147_s7, 2048, %s310_s19, [#allocation11], %s1684_s14, %s1684_s14, %s1685_s24  }
  0x4a   : > { %p2174_p6 = scmp.ne.s32.totalorder %s2170_s26, 0 }
  0x4b   : > { %p2175_p8 = scmp.ne.s32.totalorder (!%p2174_p6), %s2171_s27, 0 }
  0x4c   : > { %343 = sbr.rel (%p2174_p6) target bundleno = 724 (0x2d4), region = 56 }
  0x53   : > { %1639 = dma.done.wait (%p2175_p8), [#allocation8], 2048  }
  0x54   : > { %1641 = vsyncadd (%p2175_p8), [#allocation8], 4294965248 }
  0x55   : > { %1643 = dma.done.wait (%p2175_p8), [#allocation11], 2048  }
  0x56   : > { %1645 = vsyncadd (%p2175_p8), [#allocation11], 4294965248  ;;  %s383_s30 = sand.u32 1, %s1656_s10   ;;  %s386_s19 = ssub.s32 1, %s1668_s13 }
  0x57   : > { %s1133_s20 = sshll.u32 %s383_s30, 7  ;;  %s387_s26 = smul.u32 %s1664_s12, %s386_s19 }
  0x58   : > { %s1136_s14 = sshll.u32 %s1664_s12, 7  ;;  %p401_p0 = scmp.eq.s32.totalorder %s1668_s13, 0 }
  0x59   : > { %s388_s24 = sadd.s32 %s1668_s13, %s387_s26  ;;  %p402_p2 = scmp.eq.s32.totalorder %s1664_s12, 0 }
  0x5a   : > { %s1134_s21 = sshll.u32 %s388_s24, 4  ;;  %s1895_s29 = scalar_lea.vmem [#allocation12], %s1133_s20 }
  0x5b   : > { %p390_p10 = scmp.lt.s32.totalorder %s1134_s21, 31  ;;  %p403_p11 = pnand %p402_p2, %p401_p0 }
  0x5c   : > { %v1686_v0 = vmov (!%p403_p11), 0.0  }
  0x5d   : > { %s2197_s21 = smov (!%p390_p10, %s1134_s21), 31  ;;  %406 = sbr.rel (%p403_p11) target bundleno = 100 (0x64), region = 68 }
  0x5e   : > { %s1135_s27 = sshll.u32 %s2197_s21, 3  ;;  %407 = vst [vmem:[#allocation3] sm:$0xff] (!%p403_p11), %v1686_v0  ;;  %408 = vst [vmem:[#allocation4] sm:$0xff] (!%p403_p11), %v1686_v0 }
  0x5f   : > { %s1893_s22 = scalar_lea.vmem %s2140_s0, %s1135_s27 }
  0x64 PF: > { %p1137_p1 = scmp.ne.s32.totalorder %s1668_s13, 0 }
  0x65   : > { %v474_v1 = vld [vmem:[#allocation7] sm:$0xff] (!%p1137_p1)  ;;  %v475_v2 = vld [vmem:[#allocation7 + $0x8] sm:$0xff] (!%p1137_p1)  ;;  %v476_v3 = vld [vmem:[#allocation7 + $0x10] sm:$0xff] (!%p1137_p1)  ;;  %s1965_s26 = scalar_lea.vmem (!%p1137_p1), [#allocation2], %s1136_s14 }
  0x66   : > { %411 = sbr.rel (%p1137_p1) target bundleno = 388 (0x184), region = 72  ;;  %v1327_v4 = vpack.c.bf16 (!%p1137_p1), %v475_v2, %v474_v1  ;;  %v477_v5 = vld [vmem:[#allocation7 + $0x18] sm:$0xff] (!%p1137_p1)  ;;  %v478_v7 = vld [vmem:[#allocation7 + $0x20] sm:$0xff] (!%p1137_p1)  ;;  %v479_v8 = vld [vmem:[#allocation7 + $0x28] sm:$0xff] (!%p1137_p1) }
  0x67   : > { %v1331_v6 = vpack.c.bf16 (!%p1137_p1), %v477_v5, %v476_v3  ;;  %v1335_v9 = vpack.c.bf16 (!%p1137_p1), %v479_v8, %v478_v7  ;;  %v412_v10 = vld [vmem:[%s1893_s22] sm:$0xff] (!%p1137_p1)  ;;  %v481_v13 = vld [vmem:[#allocation7 + $0x38] sm:$0xff] (!%p1137_p1)  ;;  %v482_v19 = vld [vmem:[#allocation7 + $0x40] sm:$0xff] (!%p1137_p1) }
  0x68   : > { %1328 = vmatprep.subr.bf16.mxu0 (!%p1137_p1), %v1327_v4  ;;  %1391 = vmatprep.subr.bf16.mxu1 (!%p1137_p1), %v1327_v4  ;;  %v1902_v11 = vld [vmem:[%s2141_s1] ss:$0 sm:$0xff] (!%p1137_p1)  ;;  %v480_v12 = vld [vmem:[#allocation7 + $0x30] sm:$0xff] (!%p1137_p1)  ;;  %v485_v25 = vld [vmem:[#allocation7 + $0x58] sm:$0xff] (!%p1137_p1) }
  0x69   : > { %1330 = vmatpush3.bf16.msra.mxu0 (!%p1137_p1), %v1327_v4  ;;  %1399 = vmatpush3.bf16.msra.mxu1 (!%p1137_p1), %v1327_v4  ;;  %v435_v14 = vmul.f32 (!%p1137_p1), %v1902_v11, %v412_v10  ;;  %v1908_v15 = vld [vmem:[%s2142_s2] ss:$0 sm:$0xff] (!%p1137_p1)  ;;  %v1339_v18 = vpack.c.bf16 (!%p1137_p1), %v481_v13, %v480_v12  ;;  %v484_v24 = vld [vmem:[#allocation7 + $0x50] sm:$0xff] (!%p1137_p1)  ;;  %v486_v27 = vld [vmem:[#allocation7 + $0x60] sm:$0xff] (!%p1137_p1) }
  0x6a   : > { %1332 = vmatprep.subr.bf16.mxu0 (!%p1137_p1), %v1331_v6  ;;  %1392 = vmatprep.subr.bf16.mxu1 (!%p1137_p1), %v1331_v6  ;;  %v420_v17 = vld [vmem:[%s1893_s22 + $0x40] sm:$0xff] (!%p1137_p1)  ;;  %v1347_v26 = vpack.c.bf16 (!%p1137_p1), %v485_v25, %v484_v24  ;;  %v489_v31 = vld [vmem:[#allocation7 + $0x78] sm:$0xff] (!%p1137_p1)  ;;  %v415_v38 = vld [vmem:[%s1893_s22 + $0x18] sm:$0xff] (!%p1137_p1) }
  0x6b   : > { %v458_v16 = vadd.f32 (!%p1137_p1), %v1908_v15, %v435_v14  ;;  %v483_v20 = vld [vmem:[#allocation7 + $0x48] sm:$0xff] (!%p1137_p1)  ;;  %v443_v21 = vmul.f32 (!%p1137_p1), %v1902_v11, %v420_v17  ;;  %v488_v30 = vld [vmem:[#allocation7 + $0x70] sm:$0xff] (!%p1137_p1)  ;;  %v414_v35 = vld [vmem:[%s1893_s22 + $0x10] sm:$0xff] (!%p1137_p1)  ;;  %v438_v45 = vmul.f32 (!%p1137_p1), %v1902_v11, %v415_v38 }
  0x6c   : > { %v1343_v22 = vpack.c.bf16 (!%p1137_p1), %v483_v20, %v482_v19  ;;  %v487_v28 = vld [vmem:[#allocation7 + $0x68] sm:$0xff] (!%p1137_p1)  ;;  %v413_v32 = vld [vmem:[%s1893_s22 + $0x8] sm:$0xff] (!%p1137_p1)  ;;  %v1355_v34 = vpack.c.bf16 (!%p1137_p1), %v489_v31, %v488_v30  ;;  %v422_v36 = vld [vmem:[%s1893_s22 + $0x50] sm:$0xff] (!%p1137_p1)  ;;  %v437_v40 = vmul.f32 (!%p1137_p1), %v1902_v11, %v414_v35 }
  0x6d   : > { %1334 = vmatpush3.bf16.msra.mxu0 %v1331_v6  ;;  %1400 = vmatpush3.bf16.msra.mxu1 %v1331_v6  ;;  %v466_v23 = vadd.f32 %v1908_v15, %v443_v21  ;;  %v1351_v29 = vpack.c.bf16 %v487_v28, %v486_v27  ;;  %v421_v33 = vld [vmem:[%s1893_s22 + $0x48] sm:$0xff]  ;;  %v436_v37 = vmul.f32 %v1902_v11, %v413_v32  ;;  %v416_v41 = vld [vmem:[%s1893_s22 + $0x20] sm:$0xff]  ;;  %v423_v43 = vld [vmem:[%s1893_s22 + $0x58] sm:$0xff] }
  0x6e   : > { %1336 = vmatprep.subr.bf16.mxu0 %v1335_v9  ;;  %1393 = vmatprep.subr.bf16.mxu1 %v1335_v9  ;;  %v444_v39 = vmul.f32 %v1902_v11, %v421_v33  ;;  %v445_v42 = vmul.f32 %v1902_v11, %v422_v36  ;;  %v424_v44 = vld [vmem:[%s1893_s22 + $0x60] sm:$0xff]  ;;  %v439_v47 = vmul.f32 %v1902_v11, %v416_v41  ;;  %v417_v48 = vld [vmem:[%s1893_s22 + $0x28] sm:$0xff]  ;;  %v418_v55 = vld [vmem:[%s1893_s22 + $0x30] sm:$0xff] }
  0x6f   : > { %1247 = vmatprep.mubr.f32.mxu0 %v458_v16  ;;  %1259 = vmatprep.mubr.f32.mxu1 %v466_v23  ;;  %v459_v46 = vadd.f32 %v1908_v15, %v436_v37  ;;  %v446_v50 = vmul.f32 %v1902_v11, %v423_v43  ;;  %v460_v51 = vadd.f32 %v1908_v15, %v437_v40  ;;  %v425_v54 = vld [vmem:[%s1893_s22 + $0x68] sm:$0xff]  ;;  %v426_v56 = vld [vmem:[%s1893_s22 + $0x70] sm:$0xff]  ;;  %v419_v60 = vld [vmem:[%s1893_s22 + $0x38] sm:$0xff] }
  0x70   : > { %v467_v49 = vadd.f32 %v1908_v15, %v444_v39  ;;  %v468_v52 = vadd.f32 %v1908_v15, %v445_v42  ;;  %v447_v53 = vmul.f32 %v1902_v11, %v424_v44  ;;  %v461_v57 = vadd.f32 %v1908_v15, %v438_v45  ;;  %v427_v2 = vld [vmem:[%s1893_s22 + $0x78] sm:$0xff] }
  0x71   : > { %1338 = vmatpush3.bf16.msra.mxu0 %v1335_v9  ;;  %1401 = vmatpush3.bf16.msra.mxu1 %v1335_v9  ;;  %v440_v58 = vmul.f32 %v1902_v11, %v417_v48  ;;  %v462_v59 = vadd.f32 %v1908_v15, %v439_v47  ;;  %v469_v61 = vadd.f32 %v1908_v15, %v446_v50 }
  0x72   : > { %1340 = vmatprep.subr.bf16.mxu0 %v1339_v18  ;;  %1394 = vmatprep.subr.bf16.mxu1 %v1339_v18  ;;  %v448_v62 = vmul.f32 %v1902_v11, %v425_v54  ;;  %v441_v63 = vmul.f32 %v1902_v11, %v418_v55  ;;  %v470_v0 = vadd.f32 %v1908_v15, %v447_v53 }
  0x73   : > { %v449_v1 = vmul.f32 %v1902_v11, %v426_v56  ;;  %v442_v3 = vmul.f32 %v1902_v11, %v419_v60  ;;  %v463_v4 = vadd.f32 %v1908_v15, %v440_v58  ;;  %v450_v6 = vmul.f32 %v1902_v11, %v427_v2  ;;  %v1140_v11 = vld [vmem:[%s2144_s4] ss:$0 sm:$0xff] }
  0x74   : > { %v471_v5 = vadd.f32 %v1908_v15, %v448_v62  ;;  %v464_v7 = vadd.f32 %v1908_v15, %v441_v63 }
  0x75   : > { %1342 = vmatpush3.bf16.msra.mxu0 %v1339_v18  ;;  %1402 = vmatpush3.bf16.msra.mxu1 %v1339_v18  ;;  %v472_v8 = vadd.f32 %v1908_v15, %v449_v1  ;;  %v465_v9 = vadd.f32 %v1908_v15, %v442_v3  ;;  %v473_v10 = vadd.f32 %v1908_v15, %v450_v6 }
  0x76   : > { %1344 = vmatprep.subr.bf16.mxu0 %v1343_v22  ;;  %1395 = vmatprep.subr.bf16.mxu1 %v1343_v22 }
  0x79   : > { %1346 = vmatpush3.bf16.msra.mxu0 %v1343_v22  ;;  %1403 = vmatpush3.bf16.msra.mxu1 %v1343_v22 }
  0x7a   : > { %1348 = vmatprep.subr.bf16.mxu0 %v1347_v26  ;;  %1396 = vmatprep.subr.bf16.mxu1 %v1347_v26 }
  0x7d   : > { %1350 = vmatpush3.bf16.msra.mxu0 %v1347_v26  ;;  %1404 = vmatpush3.bf16.msra.mxu1 %v1347_v26 }
  0x7e   : > { %1352 = vmatprep.subr.bf16.mxu0 %v1351_v29  ;;  %1397 = vmatprep.subr.bf16.mxu1 %v1351_v29 }
  0x81   : > { %1354 = vmatpush3.bf16.msra.mxu0 %v1351_v29  ;;  %1405 = vmatpush3.bf16.msra.mxu1 %v1351_v29 }
  0x82   : > { %1356 = vmatprep.subr.bf16.mxu0 %v1355_v34  ;;  %1398 = vmatprep.subr.bf16.mxu1 %v1355_v34 }
  0x85   : > { %1358 = vmatpush3.bf16.msra.mxu0 %v1355_v34  ;;  %1406 = vmatpush3.bf16.msra.mxu1 %v1355_v34 }
  0x88   : > { %1248 = vmatmul.mubr.f32.vlgmr.msra.gmra.mrb[0].mxu0 %v459_v46  ;;  %1260 = vmatmul.mubr.f32.vlgmr.msra.gmra.mrb[0].mxu1 %v467_v49 }
  0x89   : > { %1250 = vmatprep.mubr.f32.mxu0 %v460_v51  ;;  %1262 = vmatprep.mubr.f32.mxu1 %v468_v52 }
  0x8c   : > { %1251 = vmatmul.mubr.f32.gmra.mrb[2].mxu0 %v461_v57  ;;  %1263 = vmatmul.mubr.f32.gmra.mrb[2].mxu1 %v469_v61 }
  0x8d   : > { %1253 = vmatprep.mubr.f32.mxu0 %v462_v59  ;;  %1265 = vmatprep.mubr.f32.mxu1 %v470_v0 }
  0x90   : > { %1254 = vmatmul.mubr.f32.gmra.mrb[4].mxu0 %v463_v4  ;;  %1266 = vmatmul.mubr.f32.gmra.mrb[4].mxu1 %v471_v5 }
  0x91   : > { %1256 = vmatprep.mubr.f32.mxu0 %v464_v7  ;;  %1268 = vmatprep.mubr.f32.mxu1 %v472_v8 }
  0x94   : > { %1257 = vmatmul.mubr.f32.gmra.mrb[6].mxu0 %v465_v9  ;;  %1269 = vmatmul.mubr.f32.gmra.mrb[6].mxu1 %v473_v10 }
 0x15b   : > { %v1249_v12 = vpop.f32.mrb[0].mxu0  ;;  %v1261_v13 = vpop.f32.mrb[0].mxu1 }
 0x15c   : > { %v569_v14 = vadd.f32 %v1249_v12, %v1140_v11  ;;  %v563_v16 = vpop.f32.mrb[1].mxu0  ;;  %v1959_v17 = vadd.f32 %v1261_v13, %v1140_v11  ;;  %v603_v18 = vpop.f32.mrb[1].mxu1 }
 0x15d   : > { %v564_v19 = vadd.f32 %v1140_v11, %v563_v16  ;;  %v1961_v20 = vadd.f32 %v1140_v11, %v603_v18 }
 0x15e   : > { %v662_v21 = vmul.f32 %v569_v14, %v569_v14  ;;  %696 = vst [vmem:[%s1965_s26 + $0x8] sm:$0xff] %v569_v14  ;;  %704 = vst [vmem:[%s1965_s26 + $0x48] sm:$0xff] %v1959_v17  ;;  %v670_v4 = vmul.f32 %v1959_v17, %v1959_v17 }
 0x15f   : > { %v643_v15 = vadd.f32 %v569_v14, %v564_v19  ;;  %v661_v22 = vmul.f32 %v564_v19, %v564_v19  ;;  %695 = vst [vmem:[%s1965_s26] sm:$0xff] %v564_v19  ;;  %v1252_v23 = vpop.f32.mrb[2].mxu0  ;;  %703 = vst [vmem:[%s1965_s26 + $0x40] sm:$0xff] %v1961_v20  ;;  %v1264_v24 = vpop.f32.mrb[2].mxu1  ;;  %v669_v1 = vmul.f32 %v1961_v20, %v1961_v20 }
 0x160   : > { %v579_v25 = vadd.f32 %v1252_v23, %v1140_v11  ;;  %v573_v26 = vpop.f32.mrb[3].mxu0  ;;  %v619_v27 = vadd.f32 %v1264_v24, %v1140_v11  ;;  %v613_v28 = vpop.f32.mrb[3].mxu1  ;;  %v642_v23 = vld [vmem:[#allocation3] sm:$0xff] }
 0x161   : > { %v677_v29 = vadd.f32 %v662_v21, %v661_v22  ;;  %v574_v30 = vadd.f32 %v1140_v11, %v573_v26  ;;  %v614_v31 = vadd.f32 %v1140_v11, %v613_v28 }
 0x162   : > { %698 = vst [vmem:[%s1965_s26 + $0x18] sm:$0xff] %v579_v25  ;;  %706 = vst [vmem:[%s1965_s26 + $0x58] sm:$0xff] %v619_v27  ;;  %v664_v36 = vmul.f32 %v579_v25, %v579_v25  ;;  %v672_v10 = vmul.f32 %v619_v27, %v619_v27 }
 0x163   : > { %v644_v32 = vadd.f32 %v643_v15, %v574_v30  ;;  %v663_v33 = vmul.f32 %v574_v30, %v574_v30  ;;  %697 = vst [vmem:[%s1965_s26 + $0x10] sm:$0xff] %v574_v30  ;;  %v1255_v34 = vpop.f32.mrb[4].mxu0  ;;  %705 = vst [vmem:[%s1965_s26 + $0x50] sm:$0xff] %v614_v31  ;;  %v1267_v35 = vpop.f32.mrb[4].mxu1  ;;  %v671_v7 = vmul.f32 %v614_v31, %v614_v31 }
 0x164   : > { %v589_v37 = vadd.f32 %v1255_v34, %v1140_v11  ;;  %v583_v38 = vpop.f32.mrb[5].mxu0  ;;  %v629_v39 = vadd.f32 %v1267_v35, %v1140_v11  ;;  %v623_v40 = vpop.f32.mrb[5].mxu1 }
 0x165   : > { %v678_v41 = vadd.f32 %v677_v29, %v663_v33  ;;  %v584_v42 = vadd.f32 %v1140_v11, %v583_v38  ;;  %v645_v43 = vadd.f32 %v644_v32, %v579_v25  ;;  %v624_v44 = vadd.f32 %v1140_v11, %v623_v40 }
 0x166   : > { %700 = vst [vmem:[%s1965_s26 + $0x28] sm:$0xff] %v589_v37  ;;  %708 = vst [vmem:[%s1965_s26 + $0x68] sm:$0xff] %v629_v39  ;;  %v666_v50 = vmul.f32 %v589_v37, %v589_v37  ;;  %v674_v18 = vmul.f32 %v629_v39, %v629_v39 }
 0x167   : > { %v646_v45 = vadd.f32 %v645_v43, %v584_v42  ;;  %v665_v46 = vmul.f32 %v584_v42, %v584_v42  ;;  %v679_v47 = vadd.f32 %v678_v41, %v664_v36  ;;  %699 = vst [vmem:[%s1965_s26 + $0x20] sm:$0xff] %v584_v42  ;;  %v1258_v48 = vpop.f32.mrb[6].mxu0  ;;  %707 = vst [vmem:[%s1965_s26 + $0x60] sm:$0xff] %v624_v44  ;;  %v1270_v49 = vpop.f32.mrb[6].mxu1 }
 0x168   : > { %v599_v51 = vadd.f32 %v1258_v48, %v1140_v11  ;;  %v593_v52 = vpop.f32.mrb[7].mxu0  ;;  %v639_v53 = vadd.f32 %v1270_v49, %v1140_v11  ;;  %v633_v54 = vpop.f32.mrb[7].mxu1  ;;  %v673_v13 = vmul.f32 %v624_v44, %v624_v44 }
 0x169   : > { %v680_v55 = vadd.f32 %v679_v47, %v665_v46  ;;  %v594_v56 = vadd.f32 %v1140_v11, %v593_v52  ;;  %v647_v57 = vadd.f32 %v646_v45, %v589_v37  ;;  %v634_v58 = vadd.f32 %v1140_v11, %v633_v54 }
 0x16a   : > { %702 = vst [vmem:[%s1965_s26 + $0x38] sm:$0xff] %v599_v51  ;;  %710 = vst [vmem:[%s1965_s26 + $0x78] sm:$0xff] %v639_v53  ;;  %v668_v62 = vmul.f32 %v599_v51, %v599_v51  ;;  %v676_v24 = vmul.f32 %v639_v53, %v639_v53 }
 0x16b   : > { %v648_v59 = vadd.f32 %v647_v57, %v594_v56  ;;  %v667_v60 = vmul.f32 %v594_v56, %v594_v56  ;;  %v681_v61 = vadd.f32 %v680_v55, %v666_v50  ;;  %701 = vst [vmem:[%s1965_s26 + $0x30] sm:$0xff] %v594_v56  ;;  %709 = vst [vmem:[%s1965_s26 + $0x70] sm:$0xff] %v634_v58 }
 0x16d   : > { %v682_v63 = vadd.f32 %v681_v61, %v667_v60  ;;  %v649_v0 = vadd.f32 %v648_v59, %v599_v51 }
 0x16f   : > { %v650_v2 = vadd.f32 %v649_v0, %v1961_v20  ;;  %v683_v3 = vadd.f32 %v682_v63, %v668_v62  ;;  %v675_v20 = vmul.f32 %v634_v58, %v634_v58 }
 0x171   : > { %v684_v5 = vadd.f32 %v683_v3, %v669_v1  ;;  %v651_v6 = vadd.f32 %v650_v2, %v1959_v17  ;;  %v660_v17 = vld [vmem:[#allocation4] sm:$0xff] }
 0x173   : > { %v652_v8 = vadd.f32 %v651_v6, %v614_v31  ;;  %v685_v9 = vadd.f32 %v684_v5, %v670_v4 }
 0x175   : > { %v686_v11 = vadd.f32 %v685_v9, %v671_v7  ;;  %v653_v12 = vadd.f32 %v652_v8, %v619_v27 }
 0x177   : > { %v654_v14 = vadd.f32 %v653_v12, %v624_v44  ;;  %v687_v16 = vadd.f32 %v686_v11, %v672_v10 }
 0x179   : > { %v688_v19 = vadd.f32 %v687_v16, %v673_v13  ;;  %v655_v21 = vadd.f32 %v654_v14, %v629_v39 }
 0x17b   : > { %v656_v15 = vadd.f32 %v655_v21, %v634_v58  ;;  %v689_v22 = vadd.f32 %v688_v19, %v674_v18 }
 0x17d   : > { %v657_v25 = vadd.f32 %v656_v15, %v639_v53  ;;  %v690_v26 = vadd.f32 %v689_v22, %v675_v20 }
 0x17f   : > { %v658_v28 = vadd.f32 %v657_v25, %v642_v23  ;;  %v691_v29 = vadd.f32 %v690_v26, %v676_v24 }
 0x181   : > { %659 = vst [vmem:[#allocation3] sm:$0xff] %v658_v28  ;;  %v692_v30 = vadd.f32 %v691_v29, %v660_v17 }
 0x183   : > { %693 = vst [vmem:[#allocation4] sm:$0xff] %v692_v30 }
 0x184 PF: > { %p711_p3 = scmp.eq.s32.totalorder %s1668_s13, 1 }
 0x186   : > { %p712_p4 = pnand %p711_p3, %p402_p2 }
 0x187   : > { %v735_v50 = vld [vmem:[%s2145_s5] sm:$0x1] (!%p712_p4) }
 0x188   : > { %715 = sbr.rel (%p712_p4) target bundleno = 433 (0x1b1), region = 76  ;;  %v716_v27 = vld [vmem:[#allocation3] sm:$0xff] (!%p712_p4) }
 0x189   : > { %v717_v32 = vrot.slane (!%p712_p4), %v716_v27, 4  ;;  %v740_v53 = vld [vmem:[%s2146_s6] sm:$0x1] (!%p712_p4) }
 0x18a   : > { %v724_v31 = vld [vmem:[#allocation4] sm:$0xff] (!%p712_p4) }
 0x18b   : > { %v725_v33 = vrot.slane (!%p712_p4), %v724_v31, 4  ;;  %v718_v34 = vadd.f32 (!%p712_p4), %v717_v32, %v716_v27 }
 0x18d   : > { %v726_v35 = vadd.f32 (!%p712_p4), %v725_v33, %v724_v31  ;;  %v719_v36 = vrot.slane (!%p712_p4), %v718_v34, 2 }
 0x18f   : > { %v727_v37 = vrot.slane %v726_v35, 2  ;;  %v720_v38 = vadd.f32 %v719_v36, %v718_v34 }
 0x191   : > { %v728_v39 = vadd.f32 %v727_v37, %v726_v35  ;;  %v721_v40 = vrot.slane %v720_v38, 1 }
 0x193   : > { %v729_v41 = vrot.slane %v728_v39, 1  ;;  %v722_v42 = vadd.f32 %v721_v40, %v720_v38 }
 0x195   : > { %v730_v43 = vadd.f32 %v729_v41, %v728_v39  ;;  %v723_v44 = vmul.f32 0.00390625, %v722_v42 }
 0x197   : > { %v731_v45 = vmul.f32 0.00390625, %v730_v43  ;;  %v732_v46 = vmul.f32 %v723_v44, %v723_v44 }
 0x199   : > { %v733_v47 = vsub.f32 %v731_v45, %v732_v46 }
 0x19b   : > { %v734_v48 = vmax.f32 %v733_v47, 0.0 }
 0x19d   : > { %v736_v49 = vadd.f32 1e-05, %v734_v48 }
 0x19f   : > { %1520 = vrsqrt.f32 %v736_v49 }
 0x1a9   : > { %v1521_v51 = vpop.eup %1520 }
 0x1aa   : > { %v738_v52 = vmul.f32 %v1521_v51, %v735_v50 }
 0x1ac   : > { %739 = vst [vmem:[#allocation5] sm:$0x1] %v738_v52  ;;  %v741_v54 = vmul.f32 %v738_v52, %v723_v44 }
 0x1ae   : > { %v742_v55 = vsub.f32 %v740_v53, %v741_v54 }
 0x1b0   : > { %743 = vst [vmem:[#allocation6] sm:$0x1] %v742_v55 }
 0x1b1 PF: > { %p1141_p5 = scmp.ne.s32.totalorder %s1668_s13, 1 }
 0x1b2   : > { %v826_v56 = vld [vmem:[#allocation10] sm:$0xff] (!%p1141_p5)  ;;  %v827_v57 = vld [vmem:[#allocation10 + $0x8] sm:$0xff] (!%p1141_p5)  ;;  %v828_v58 = vld [vmem:[#allocation10 + $0x10] sm:$0xff] (!%p1141_p5)  ;;  %s2003_s28 = scalar_lea.vmem (!%p1141_p5), [#allocation2], %s1136_s14 }
 0x1b3   : > { %746 = sbr.rel (%p1141_p5) target bundleno = 697 (0x2b9), region = 80  ;;  %v1359_v59 = vpack.c.bf16 (!%p1141_p5), %v827_v57, %v826_v56  ;;  %v829_v60 = vld [vmem:[#allocation10 + $0x18] sm:$0xff] (!%p1141_p5)  ;;  %v830_v62 = vld [vmem:[#allocation10 + $0x20] sm:$0xff] (!%p1141_p5)  ;;  %v831_v63 = vld [vmem:[#allocation10 + $0x28] sm:$0xff] (!%p1141_p5) }
 0x1b4   : > { %v1363_v61 = vpack.c.bf16 (!%p1141_p5), %v829_v60, %v828_v58  ;;  %v1367_v0 = vpack.c.bf16 (!%p1141_p5), %v831_v63, %v830_v62  ;;  %v832_v1 = vld [vmem:[#allocation10 + $0x30] sm:$0xff] (!%p1141_p5)  ;;  %v2006_v3 = vld [vmem:[#allocation5] ss:$0 sm:$0xff] (!%p1141_p5)  ;;  %v834_v12 = vld [vmem:[#allocation10 + $0x40] sm:$0xff] (!%p1141_p5) }
 0x1b5   : > { %1360 = vmatprep.subr.bf16.mxu0 (!%p1141_p5), %v1359_v59  ;;  %1407 = vmatprep.subr.bf16.mxu1 (!%p1141_p5), %v1359_v59  ;;  %v748_v2 = vld [vmem:[%s2003_s28] sm:$0xff] (!%p1141_p5)  ;;  %v833_v4 = vld [vmem:[#allocation10 + $0x38] sm:$0xff] (!%p1141_p5)  ;;  %v838_v15 = vld [vmem:[#allocation10 + $0x60] sm:$0xff] (!%p1141_p5) }
 0x1b6   : > { %1362 = vmatpush3.bf16.msra.mxu0 (!%p1141_p5), %v1359_v59  ;;  %1415 = vmatpush3.bf16.msra.mxu1 (!%p1141_p5), %v1359_v59  ;;  %v771_v5 = vmul.f32 (!%p1141_p5), %v2006_v3, %v748_v2  ;;  %v756_v7 = vld [vmem:[%s2003_s28 + $0x40] sm:$0xff] (!%p1141_p5)  ;;  %v1371_v10 = vpack.c.bf16 (!%p1141_p5), %v833_v4, %v832_v1  ;;  %v837_v21 = vld [vmem:[#allocation10 + $0x58] sm:$0xff] (!%p1141_p5)  ;;  %v751_v32 = vld [vmem:[%s2003_s28 + $0x18] sm:$0xff] (!%p1141_p5) }
 0x1b7   : > { %1364 = vmatprep.subr.bf16.mxu0 (!%p1141_p5), %v1363_v61  ;;  %1408 = vmatprep.subr.bf16.mxu1 (!%p1141_p5), %v1363_v61  ;;  %v2009_v6 = vld [vmem:[#allocation6] ss:$0 sm:$0xff] (!%p1141_p5)  ;;  %v779_v8 = vmul.f32 (!%p1141_p5), %v2006_v3, %v756_v7  ;;  %v835_v13 = vld [vmem:[#allocation10 + $0x48] sm:$0xff] (!%p1141_p5)  ;;  %v836_v19 = vld [vmem:[#allocation10 + $0x50] sm:$0xff] (!%p1141_p5)  ;;  %v774_v40 = vmul.f32 (!%p1141_p5), %v2006_v3, %v751_v32 }
 0x1b8   : > { %v794_v9 = vadd.f32 (!%p1141_p5), %v2009_v6, %v771_v5  ;;  %v1375_v18 = vpack.c.bf16 (!%p1141_p5), %v835_v13, %v834_v12  ;;  %v1379_v20 = vpack.c.bf16 (!%p1141_p5), %v837_v21, %v836_v19  ;;  %v839_v22 = vld [vmem:[#allocation10 + $0x68] sm:$0xff] (!%p1141_p5)  ;;  %v749_v23 = vld [vmem:[%s2003_s28 + $0x8] sm:$0xff] (!%p1141_p5)  ;;  %v750_v25 = vld [vmem:[%s2003_s28 + $0x10] sm:$0xff] (!%p1141_p5) }
 0x1b9   : > { %v802_v11 = vadd.f32 (!%p1141_p5), %v2009_v6, %v779_v8  ;;  %v757_v24 = vld [vmem:[%s2003_s28 + $0x48] sm:$0xff] (!%p1141_p5)  ;;  %v1383_v26 = vpack.c.bf16 (!%p1141_p5), %v839_v22, %v838_v15  ;;  %v758_v17 = vld [vmem:[%s2003_s28 + $0x50] sm:$0xff] (!%p1141_p5)  ;;  %v772_v30 = vmul.f32 (!%p1141_p5), %v2006_v3, %v749_v23  ;;  %v773_v31 = vmul.f32 (!%p1141_p5), %v2006_v3, %v750_v25  ;;  %v759_v34 = vld [vmem:[%s2003_s28 + $0x58] sm:$0xff] (!%p1141_p5) }
 0x1ba   : > { %1366 = vmatpush3.bf16.msra.mxu0 %v1363_v61  ;;  %1416 = vmatpush3.bf16.msra.mxu1 %v1363_v61  ;;  %v810_v14 = vmax.f32 %v794_v9, 0.0  ;;  %v840_v28 = vld [vmem:[#allocation10 + $0x70] sm:$0xff]  ;;  %v841_v29 = vld [vmem:[#allocation10 + $0x78] sm:$0xff]  ;;  %v780_v27 = vmul.f32 %v2006_v3, %v757_v24  ;;  %v781_v33 = vmul.f32 %v2006_v3, %v758_v17  ;;  %v782_v42 = vmul.f32 %v2006_v3, %v759_v34  ;;  %v755_v62 = vld [vmem:[%s2003_s28 + $0x38] sm:$0xff] }
 0x1bb   : > { %1368 = vmatprep.subr.bf16.mxu0 %v1367_v0  ;;  %1409 = vmatprep.subr.bf16.mxu1 %v1367_v0  ;;  %v818_v16 = vmax.f32 %v802_v11, 0.0  ;;  %v752_v35 = vld [vmem:[%s2003_s28 + $0x20] sm:$0xff]  ;;  %v1387_v36 = vpack.c.bf16 %v841_v29, %v840_v28  ;;  %v795_v38 = vadd.f32 %v2009_v6, %v772_v30  ;;  %v796_v41 = vadd.f32 %v2009_v6, %v773_v31  ;;  %v753_v44 = vld [vmem:[%s2003_s28 + $0x28] sm:$0xff]  ;;  %v754_v48 = vld [vmem:[%s2003_s28 + $0x30] sm:$0xff] }
 0x1bc   : > { %1303 = vmatprep.mubr.f32.mxu0 %v810_v14  ;;  %v760_v37 = vld [vmem:[%s2003_s28 + $0x60] sm:$0xff]  ;;  %v803_v39 = vadd.f32 %v2009_v6, %v780_v27  ;;  %v775_v43 = vmul.f32 %v2006_v3, %v752_v35  ;;  %v804_v45 = vadd.f32 %v2009_v6, %v781_v33  ;;  %v761_v47 = vld [vmem:[%s2003_s28 + $0x68] sm:$0xff]  ;;  %v762_v49 = vld [vmem:[%s2003_s28 + $0x70] sm:$0xff]  ;;  %v797_v52 = vadd.f32 %v2009_v6, %v774_v40 }
 0x1bd   : > { %1315 = vmatprep.mubr.f32.mxu1 %v818_v16  ;;  %v783_v46 = vmul.f32 %v2006_v3, %v760_v37  ;;  %v811_v50 = vmax.f32 %v795_v38, 0.0  ;;  %v776_v53 = vmul.f32 %v2006_v3, %v753_v44  ;;  %v812_v54 = vmax.f32 %v796_v41, 0.0  ;;  %v763_v63 = vld [vmem:[%s2003_s28 + $0x78] sm:$0xff] }
 0x1be   : > { %1370 = vmatpush3.bf16.msra.mxu0 %v1367_v0  ;;  %1417 = vmatpush3.bf16.msra.mxu1 %v1367_v0  ;;  %v819_v51 = vmax.f32 %v803_v39, 0.0  ;;  %v805_v55 = vadd.f32 %v2009_v6, %v782_v42  ;;  %v798_v56 = vadd.f32 %v2009_v6, %v775_v43  ;;  %v784_v57 = vmul.f32 %v2006_v3, %v761_v47 }
 0x1bf   : > { %1372 = vmatprep.subr.bf16.mxu0 %v1371_v10  ;;  %1410 = vmatprep.subr.bf16.mxu1 %v1371_v10  ;;  %v820_v58 = vmax.f32 %v804_v45, 0.0  ;;  %v806_v59 = vadd.f32 %v2009_v6, %v783_v46  ;;  %v777_v60 = vmul.f32 %v2006_v3, %v754_v48  ;;  %v785_v61 = vmul.f32 %v2006_v3, %v762_v49 }
 0x1c0   : > { %v813_v0 = vmax.f32 %v797_v52, 0.0  ;;  %v799_v1 = vadd.f32 %v2009_v6, %v776_v53  ;;  %v821_v2 = vmax.f32 %v805_v55, 0.0  ;;  %v807_v4 = vadd.f32 %v2009_v6, %v784_v57 }
 0x1c1   : > { %v778_v5 = vmul.f32 %v2006_v3, %v755_v62  ;;  %v786_v7 = vmul.f32 %v2006_v3, %v763_v63  ;;  %v814_v8 = vmax.f32 %v798_v56, 0.0  ;;  %v822_v9 = vmax.f32 %v806_v59, 0.0 }
 0x1c2   : > { %1374 = vmatpush3.bf16.msra.mxu0 %v1371_v10  ;;  %1418 = vmatpush3.bf16.msra.mxu1 %v1371_v10  ;;  %v800_v10 = vadd.f32 %v2009_v6, %v777_v60  ;;  %v808_v11 = vadd.f32 %v2009_v6, %v785_v61  ;;  %v815_v12 = vmax.f32 %v799_v1, 0.0  ;;  %v823_v13 = vmax.f32 %v807_v4, 0.0 }
 0x1c3   : > { %1376 = vmatprep.subr.bf16.mxu0 %v1375_v18  ;;  %1411 = vmatprep.subr.bf16.mxu1 %v1375_v18  ;;  %v801_v14 = vadd.f32 %v2009_v6, %v778_v5  ;;  %v809_v16 = vadd.f32 %v2009_v6, %v786_v7  ;;  %v1144_v6 = vld [vmem:[%s2148_s8] ss:$0 sm:$0xff] }
 0x1c4   : > { %v824_v3 = vmax.f32 %v808_v11, 0.0 }
 0x1c5   : > { %v817_v19 = vmax.f32 %v801_v14, 0.0  ;;  %v825_v21 = vmax.f32 %v809_v16, 0.0 }
 0x1c6   : > { %1378 = vmatpush3.bf16.msra.mxu0 %v1375_v18  ;;  %1419 = vmatpush3.bf16.msra.mxu1 %v1375_v18  ;;  %v816_v18 = vmax.f32 %v800_v10, 0.0 }
 0x1c7   : > { %1380 = vmatprep.subr.bf16.mxu0 %v1379_v20  ;;  %1412 = vmatprep.subr.bf16.mxu1 %v1379_v20 }
 0x1ca   : > { %1382 = vmatpush3.bf16.msra.mxu0 %v1379_v20  ;;  %1420 = vmatpush3.bf16.msra.mxu1 %v1379_v20 }
 0x1cb   : > { %1384 = vmatprep.subr.bf16.mxu0 %v1383_v26  ;;  %1413 = vmatprep.subr.bf16.mxu1 %v1383_v26 }
 0x1ce   : > { %1386 = vmatpush3.bf16.msra.mxu0 %v1383_v26  ;;  %1421 = vmatpush3.bf16.msra.mxu1 %v1383_v26 }
 0x1cf   : > { %1388 = vmatprep.subr.bf16.mxu0 %v1387_v36  ;;  %1414 = vmatprep.subr.bf16.mxu1 %v1387_v36 }
 0x1d2   : > { %1390 = vmatpush3.bf16.msra.mxu0 %v1387_v36  ;;  %1422 = vmatpush3.bf16.msra.mxu1 %v1387_v36 }
 0x1d5   : > { %1304 = vmatmul.mubr.f32.vlgmr.msra.gmra.mrb[0].mxu0 %v811_v50  ;;  %1316 = vmatmul.mubr.f32.vlgmr.msra.gmra.mrb[0].mxu1 %v819_v51 }
 0x1d6   : > { %1306 = vmatprep.mubr.f32.mxu0 %v812_v54  ;;  %1318 = vmatprep.mubr.f32.mxu1 %v820_v58 }
 0x1d9   : > { %1307 = vmatmul.mubr.f32.gmra.mrb[2].mxu0 %v813_v0  ;;  %1319 = vmatmul.mubr.f32.gmra.mrb[2].mxu1 %v821_v2 }
 0x1da   : > { %1309 = vmatprep.mubr.f32.mxu0 %v814_v8  ;;  %1321 = vmatprep.mubr.f32.mxu1 %v822_v9 }
 0x1dd   : > { %1310 = vmatmul.mubr.f32.gmra.mrb[4].mxu0 %v815_v12  ;;  %1322 = vmatmul.mubr.f32.gmra.mrb[4].mxu1 %v823_v13 }
 0x1de   : > { %1312 = vmatprep.mubr.f32.mxu0 %v816_v18  ;;  %1324 = vmatprep.mubr.f32.mxu1 %v824_v3 }
 0x1e1   : > { %1313 = vmatmul.mubr.f32.gmra.mrb[6].mxu0 %v817_v19  ;;  %1325 = vmatmul.mubr.f32.gmra.mrb[6].mxu1 %v825_v21 }
 0x2a8   : > { %v1305_v20 = vpop.f32.mrb[0].mxu0  ;;  %v1317_v15 = vpop.f32.mrb[0].mxu1 }
 0x2a9   : > { %v921_v22 = vadd.f32 %v1305_v20, %v1144_v6  ;;  %v961_v23 = vadd.f32 %v1317_v15, %v1144_v6  ;;  %v915_v24 = vpop.f32.mrb[1].mxu0  ;;  %v955_v25 = vpop.f32.mrb[1].mxu1 }
 0x2aa   : > { %v916_v26 = vadd.f32 %v1144_v6, %v915_v24  ;;  %v956_v17 = vadd.f32 %v1144_v6, %v955_v25 }
 0x2ab   : > { %995 = vst [vmem:[%s1895_s29 + $0x8] sm:$0xff] %v921_v22  ;;  %1003 = vst [vmem:[%s1895_s29 + $0x48] sm:$0xff] %v961_v23 }
 0x2ac   : > { %994 = vst [vmem:[%s1895_s29] sm:$0xff] %v916_v26  ;;  %1002 = vst [vmem:[%s1895_s29 + $0x40] sm:$0xff] %v956_v17  ;;  %v1308_v28 = vpop.f32.mrb[2].mxu0  ;;  %v1320_v29 = vpop.f32.mrb[2].mxu1 }
 0x2ad   : > { %v931_v30 = vadd.f32 %v1308_v28, %v1144_v6  ;;  %v971_v27 = vadd.f32 %v1320_v29, %v1144_v6  ;;  %v925_v31 = vpop.f32.mrb[3].mxu0  ;;  %v965_v32 = vpop.f32.mrb[3].mxu1 }
 0x2ae   : > { %v926_v33 = vadd.f32 %v1144_v6, %v925_v31  ;;  %v966_v34 = vadd.f32 %v1144_v6, %v965_v32 }
 0x2af   : > { %997 = vst [vmem:[%s1895_s29 + $0x18] sm:$0xff] %v931_v30  ;;  %1005 = vst [vmem:[%s1895_s29 + $0x58] sm:$0xff] %v971_v27 }
 0x2b0   : > { %996 = vst [vmem:[%s1895_s29 + $0x10] sm:$0xff] %v926_v33  ;;  %1004 = vst [vmem:[%s1895_s29 + $0x50] sm:$0xff] %v966_v34  ;;  %v1311_v35 = vpop.f32.mrb[4].mxu0  ;;  %v1323_v36 = vpop.f32.mrb[4].mxu1 }
 0x2b1   : > { %v941_v37 = vadd.f32 %v1311_v35, %v1144_v6  ;;  %v981_v38 = vadd.f32 %v1323_v36, %v1144_v6  ;;  %v935_v39 = vpop.f32.mrb[5].mxu0  ;;  %v975_v40 = vpop.f32.mrb[5].mxu1 }
 0x2b2   : > { %v936_v41 = vadd.f32 %v1144_v6, %v935_v39  ;;  %v976_v42 = vadd.f32 %v1144_v6, %v975_v40 }
 0x2b3   : > { %999 = vst [vmem:[%s1895_s29 + $0x28] sm:$0xff] %v941_v37  ;;  %1007 = vst [vmem:[%s1895_s29 + $0x68] sm:$0xff] %v981_v38 }
 0x2b4   : > { %998 = vst [vmem:[%s1895_s29 + $0x20] sm:$0xff] %v936_v41  ;;  %1006 = vst [vmem:[%s1895_s29 + $0x60] sm:$0xff] %v976_v42  ;;  %v1314_v43 = vpop.f32.mrb[6].mxu0  ;;  %v1326_v44 = vpop.f32.mrb[6].mxu1 }
 0x2b5   : > { %v951_v45 = vadd.f32 %v1314_v43, %v1144_v6  ;;  %v991_v46 = vadd.f32 %v1326_v44, %v1144_v6  ;;  %v945_v47 = vpop.f32.mrb[7].mxu0  ;;  %v985_v48 = vpop.f32.mrb[7].mxu1 }
 0x2b6   : > { %v946_v49 = vadd.f32 %v1144_v6, %v945_v47  ;;  %v986_v50 = vadd.f32 %v1144_v6, %v985_v48 }
 0x2b7   : > { %1001 = vst [vmem:[%s1895_s29 + $0x38] sm:$0xff] %v951_v45  ;;  %1009 = vst [vmem:[%s1895_s29 + $0x78] sm:$0xff] %v991_v46 }
 0x2b8   : > { %1000 = vst [vmem:[%s1895_s29 + $0x30] sm:$0xff] %v946_v49  ;;  %1008 = vst [vmem:[%s1895_s29 + $0x70] sm:$0xff] %v986_v50 }
 0x2b9 PF: > { %s1018_s17 = smul.u32 %s1664_s12, %s1668_s13  ;;  %s1025_s18 = sshll.u32 %s1895_s29, 4  ;;  %s2079_s18 = int_to_ptr.vmem [resolvable:$true] %s1025_s18 }
 0x2ba   : > { %s2088_s26 = scalar_lea.sflag [#allocation9], %s383_s30  ;;  %s1578_s24 = scalar_lea.vmem %s2079_s18, 2048 }
 0x2bb   : > { %s1150_s11 = sshll.u32 %s1018_s17, 11  ;;  %p1579_p7 = scmp.ne.s32.totalorder %s2079_s18, %s1578_s24 }
 0x2bc   : > { %s2084_s20 = scalar_lea.hbm %s2149_s9, %s1150_s11  ;;  %p2176_p9 = scmp.ne.s32.totalorder %s2166_s23, 0 }
 0x2bd   : > { %s1687_s12 = smov [#allocation12]  }
 0x2be   : > { %p1580_p12 = pnand %p1579_p7, %p2176_p9  ;;  %s1582_s13 = sshll.u32 %s1687_s12, 4  ;;  %s1583_s13 = int_to_ptr.vmem [resolvable:$false] %s1582_s13 }
 0x2bf   : > { %s1584_s29 = scalar_lea.vmem %s1583_s13, 4096  ;;  %p1585_p6 = scmp.lt.s32.totalorder %s2079_s18, %s1583_s13 }
 0x2c0   : > { %p1581_p13 = pneg %p1580_p12  ;;  %p1586_p8 = scmp.lt.s32.totalorder %s1584_s29, %s1578_s24 }
 0x2c2   : > { %p1587_p0 = por %p1586_p8, %p1585_p6 }
 0x2c4   : > { %p1588_p2 = pnand %p1587_p0, %p1581_p13 }
 0x2c6   : > { %1591 = shalt.err (!%p1588_p2)
}
 0x2c7   : > { %s1592_s30 = scalar_lea.hbm %s2084_s20, 2048  ;;  %s1596_s25 = scalar_lea.hbm %s2149_s9, 4096 }
 0x2c8   : > { %p1593_p10 = scmp.ne.s32.totalorder %s2084_s20, %s1592_s30  ;;  %p1597_p3 = scmp.lt.u32.totalorder %s2084_s20, %s2149_s9 }
 0x2c9   : > { %p1598_p4 = scmp.lt.u32.totalorder %s1596_s25, %s1592_s30  ;;  %p1600_p7 = scmp.lt.u32.totalorder %s1592_s30, %s2084_s20 }
 0x2ca   : > { %p1594_p11 = pnand %p1593_p10, %p2176_p9 }
 0x2cb   : > { %p1599_p5 = por %p1598_p4, %p1597_p3 }
 0x2cc   : > { %p1595_p1 = pneg %p1594_p11 }
 0x2cd   : > { %p1601_p12 = por %p1600_p7, %p1599_p5 }
 0x2cf   : > { %p1602_p13 = pnand %p1601_p12, %p1595_p1 }
 0x2d1   : > { %1605 = shalt.err (!%p1602_p13)
}
 0x2d2   : > { %s1688_s22 = smov 128   ;;  %s1689_s17 = smov 8  }
 0x2d3   : > { %1431 = dma.vmem_to_hbm [thread:$0]  (%p2176_p9), %s2079_s18, 2048, %s2084_s20, %s2088_s26, %s1688_s22, %s1688_s22, %s1689_s17  }
 0x2d4 PF: > { %s2177_s11 = sld [smem:[#allocation16_spill]]  ;;  %s2178_s15 = sld [smem:[#allocation22_spill]] }
 0x2d5   : > { %p1448_p6 = scmp.ge.s32.totalorder %s1680_s16, 2 }
 0x2da   : > { %s1040_s19 = sand.u32 1, %s2177_s11   ;;  %p2179_p8 = scmp.ne.s32.totalorder %s2178_s15, 0 }
 0x2db   : > { %s1041_s24 = scalar_lea.sflag [#allocation9], %s1040_s19 }
 0x2dc   : > { %p1441_p0 = pnand %p1448_p6, %p2179_p8 }
 0x2de   : > { %1647 = dma.done.wait (!%p1441_p0), %s1041_s24, 2048  }
 0x2df   : > { %1649 = vsyncadd (!%p1441_p0), %s1041_s24, 4294965248  ;;  %s24_s16 = sadd.s32 1, %s1680_s16   ;;  %s2180_s12 = sld [smem:[#allocation17_spill]] }
 0x2e0   : > { %p21_p2 = scmp.ge.s32.totalorder %s24_s16, 6   ;;  %s2181_s11 = sld [smem:[#allocation23_spill]] }
 0x2e1   : > { %s2182_s13 = sld [smem:[#allocation18_spill]]  ;;  %s2183_s23 = sld [smem:[#allocation19_spill]] }
 0x2e2   : > { %s2184_s14 = sld [smem:[#allocation20_spill]]  ;;  %s2185_s15 = sld [smem:[#allocation21_spill]] }
 0x2e3   : > { %s2186_s30 = smov %s1656_s10  ;;  %23 = sbr.rel (!%p21_p2) target bundleno = 7 (0x7), region = 118 }
 0x2e5   : > { %s2187_s10 = smov %s2180_s12 }
 0x2e7   : > { %s2188_s12 = smov %s2182_s13  ;;  %s2189_s13 = smov %s2183_s23 }
 0x2ea   :  { %1046 = vsyncpa [#allocation8], 1 }
 0x2eb   :  { %1048 = vsyncpa [#allocation8 + $0x1], 1 }
 0x2ec   :  { %1049 = vsyncpa [#allocation11], 1 }
 0x2ed   :  { %1050 = vsyncpa [#allocation9], 1 }
 0x2ee   :  { %1052 = vsyncpa [#allocation9 + $0x1], 1 }

</bundles_post_ra>
